<compile_context>
chip_gen: v7x
topology: tpu7x:2x2x1
jax: 0.10.0
libtpu: 0.0.40
codegen_flags: <defaults>
</compile_context>

<pallas_src>
import numpy as np
import jax
import jax.numpy as jnp
from jax.experimental import pallas as pl
from jax.experimental.pallas import tpu as pltpu


def _round_up(n, m):
    return ((n + m - 1) // m) * m


# ------------- resident-block specs: single-buffered, with version fallback ----------

_SINGLE_BUFFER_OK = hasattr(pl, "Buffered")


def _resident_spec(shape, index_map, single_buffer):
    """BlockSpec for a block that is identical at every grid step (weights, bias,
    ilens).  pl.Buffered(1) disables the default double buffering for it, halving
    its VMEM footprint — the biggest VMEM saver at realistic cdim."""
    if single_buffer:
        return pl.BlockSpec(shape, index_map, pipeline_mode=pl.Buffered(1))
    return pl.BlockSpec(shape, index_map)


def _run(build, *args):
    """build(single_buffer) -> pallas_call callable.  Falls back to default
    double-buffered resident specs if this JAX/Mosaic rejects pl.Buffered(1)."""
    global _SINGLE_BUFFER_OK
    if _SINGLE_BUFFER_OK:
        try:
            return build(True)(*args)
        except Exception:  # noqa: BLE001 - construction or lowering failure
            _SINGLE_BUFFER_OK = False
    return build(False)(*args)


# --------------------------- fused linear (GEMM) kernel ------------------------------

def _make_linear_kernel(n_in, out_cols, activation):
    """One MXU dot per row tile: concat(xs, -1) @ W + b, sliced into the outputs."""
    def kernel(*refs):
        x_refs = refs[:n_in]
        w_ref = refs[n_in]
        b_ref = refs[n_in + 1]
        o_refs = refs[n_in + 2:]
        if n_in == 1:
            x = x_refs[0][...]
        else:
            # lane-aligned concat (all widths are multiples of 128) -> cheap in VMEM
            x = jnp.concatenate([r[...] for r in x_refs], axis=-1)
        acc = jnp.dot(x, w_ref[...], preferred_element_type=jnp.float32) + b_ref[...]
        if activation == "tanh":
            acc = jnp.tanh(acc)
        off = 0
        for o_ref, c in zip(o_refs, out_cols):
            o_ref[...] = acc[:, off:off + c].astype(o_ref.dtype)   # lane-aligned slice
            off += c
    return kernel


def fused_linear(xs, w, b, out_cols, activation=None, out_dtype=jnp.bfloat16,
                 row_tile=512):
    """Row-tiled fused linear.

    xs:  list of (N, D_i) bf16 inputs (same N).
    w:   (sum D_i, sum C_j) bf16 weight, VMEM-resident (single-buffered).
    b:   (1, sum C_j) f32 bias, resident.
    Returns list of (N, C_j) arrays of `out_dtype` (outputs j split at lane-aligned
    column offsets of `out_cols`).
    """
    n_in = len(xs)
    N = xs[0].shape[0]
    rt = min(row_tile, _round_up(N, 8))
    Np = _round_up(N, rt)
    if Np != N:
        xs = [jnp.pad(a, ((0, Np - N), (0, 0))) for a in xs]

    # Explicit VMEM budget: double-buffered x/out tiles + weights (x2 covers the
    # double-buffered fallback) + headroom.
    x_bytes = sum(rt * a.shape[1] * a.dtype.itemsize for a in xs)
    o_bytes = sum(rt * c * jnp.dtype(out_dtype).itemsize for c in out_cols)
    w_bytes = w.size * w.dtype.itemsize + b.size * b.dtype.itemsize
    vmem_limit = min(2 * (x_bytes + o_bytes) + 2 * w_bytes + (8 << 20),
                     100 * 1024 * 1024)

    def build(single_buffer):
        in_specs = (
            [pl.BlockSpec((rt, a.shape[1]), lambda r: (r, 0)) for a in xs]
            + [_resident_spec(w.shape, lambda r: (0, 0), single_buffer),
               _resident_spec(b.shape, lambda r: (0, 0), single_buffer)]
        )
        out_specs = [pl.BlockSpec((rt, c), lambda r: (r, 0)) for c in out_cols]
        out_shape = [jax.ShapeDtypeStruct((Np, c), out_dtype) for c in out_cols]
        return pl.pallas_call(
            _make_linear_kernel(n_in, out_cols, activation),
            out_shape=out_shape,
            grid=(Np // rt,),
            in_specs=in_specs,
            out_specs=out_specs,
            compiler_params=pltpu.CompilerParams(
                dimension_semantics=("parallel",),
                vmem_limit_bytes=vmem_limit),
        )

    outs = _run(build, *xs, w, b)
    if Np != N:
        outs = [o[:N] for o in outs]
    return list(outs)


# ----------------------- fused bidirectional LSTM recurrence -------------------------

def bilstm_chunk_kernel(lens_ref, gxf_ref, gxb_ref, whhf_ref, whhb_ref,
                        yf_ref, yb_ref, hf_ref, cf_ref, hb_ref, cb_ref):
    """One grid step = one time chunk for BOTH directions.

    Forward processes global times [c*CHUNK, (c+1)*CHUNK) ascending.
    Backward processes global times [(C-1-c)*CHUNK, (C-c)*CHUNK) descending.
    h/c are f32 and persist in VMEM scratch across chunks.
    """
    c = pl.program_id(0)
    C = pl.num_programs(0)
    CHUNK = gxf_ref.shape[0]
    H = hf_ref.shape[-1]

    @pl.when(c == 0)
    def _():
        hf_ref[...] = jnp.zeros_like(hf_ref)
        cf_ref[...] = jnp.zeros_like(cf_ref)
        hb_ref[...] = jnp.zeros_like(hb_ref)
        cb_ref[...] = jnp.zeros_like(cb_ref)

    lens = lens_ref[...]                 # (B, 1) int32, resident
    wf = whhf_ref[...]                   # (H, 4H) bf16 recurrent weights, resident
    wb = whhb_ref[...]
    t0_f = c * CHUNK                     # first global timestep of fwd chunk
    t0_b = (C - 1 - c) * CHUNK           # first global timestep of bwd chunk

    def sigmoid(x):
        # one EUP tanh instead of exp + reciprocal
        return 0.5 * jnp.tanh(0.5 * x) + 0.5

    def lstm_cell(gx, h, cc, w):
        # gx holds x @ W_ih + b (hoisted GEMM, bf16); PyTorch gate order i,f,g,o.
        gates = gx.astype(jnp.float32) + jnp.dot(
            h.astype(w.dtype), w, preferred_element_type=jnp.float32)
        i = sigmoid(gates[:, 0 * H:1 * H])
        f = sigmoid(gates[:, 1 * H:2 * H])
        g = jnp.tanh(gates[:, 2 * H:3 * H])
        o = sigmoid(gates[:, 3 * H:4 * H])
        c_new = f * cc + i * g
        return o * jnp.tanh(c_new), c_new

    def body(k, carry):
        hf, cf, hb, cb = carry
        # forward direction (time ascending)
        m = (t0_f + k) < lens                                   # (B, 1) valid mask
        h_new, c_new = lstm_cell(gxf_ref[k], hf, cf, wf)
        hf = jnp.where(m, h_new, hf)
        cf = jnp.where(m, c_new, cf)
        yf_ref[k] = jnp.where(m, h_new, 0.0).astype(yf_ref.dtype)
        # backward direction (time descending): state stays frozen (zero) until
        # t < ilens[b], i.e. it effectively starts at t = ilens[b]-1.
        kb = CHUNK - 1 - k
        mb = (t0_b + kb) < lens
        hb_new, cb_new = lstm_cell(gxb_ref[kb], hb, cb, wb)
        hb = jnp.where(mb, hb_new, hb)
        cb = jnp.where(mb, cb_new, cb)
        yb_ref[kb] = jnp.where(mb, hb_new, 0.0).astype(yb_ref.dtype)
        return hf, cf, hb, cb

    carry0 = (hf_ref[...], cf_ref[...], hb_ref[...], cb_ref[...])
    # Modest unroll: lets the scheduler interleave one direction's MXU pushes with
    # the other direction's EUP/tanh work and the previous step's stores.
    hf, cf, hb, cb = jax.lax.fori_loop(0, CHUNK, body, carry0, unroll=2)
    hf_ref[...] = hf
    cf_ref[...] = cf
    hb_ref[...] = hb
    cb_ref[...] = cb


def bilstm_recurrence(gx_f, gx_b, whh_f, whh_b, lens, H, chunk):
    """gx_f/gx_b: (Tpad, B, 4H) bf16 precomputed input gates.
    Returns yf, yb: (Tpad, B, H) bf16."""
    Tpad, B, G = gx_f.shape
    C = Tpad // chunk

    def fwd_map(c):
        return (c, 0, 0)

    def bwd_map(c):
        return (C - 1 - c, 0, 0)

    gx_bytes = chunk * B * G * gx_f.dtype.itemsize
    y_bytes = chunk * B * H * 2
    w_bytes = whh_f.size * whh_f.dtype.itemsize
    vmem_limit = min(2 * (2 * gx_bytes + 2 * y_bytes + 2 * w_bytes)
                     + 4 * B * H * 4 + (8 << 20), 100 * 1024 * 1024)

    def build(single_buffer):
        return pl.pallas_call(
            bilstm_chunk_kernel,
            out_shape=(jax.ShapeDtypeStruct((Tpad, B, H), jnp.bfloat16),
                       jax.ShapeDtypeStruct((Tpad, B, H), jnp.bfloat16)),
            grid_spec=pltpu.PrefetchScalarGridSpec(
                num_scalar_prefetch=0,
                grid=(C,),
                in_specs=[
                    _resident_spec((B, 1), lambda c: (0, 0), single_buffer),   # ilens
                    pl.BlockSpec((chunk, B, G), fwd_map),                      # gx fwd chunk
                    pl.BlockSpec((chunk, B, G), bwd_map),                      # gx bwd chunk
                    _resident_spec((H, G), lambda c: (0, 0), single_buffer),   # W_hh fwd
                    _resident_spec((H, G), lambda c: (0, 0), single_buffer),   # W_hh bwd
                ],
                out_specs=[pl.BlockSpec((chunk, B, H), fwd_map),
                           pl.BlockSpec((chunk, B, H), bwd_map)],
                scratch_shapes=[pltpu.VMEM((B, H), jnp.float32)] * 4,          # h/c f32
            ),
            compiler_params=pltpu.CompilerParams(
                dimension_semantics=("arbitrary",),
                vmem_limit_bytes=vmem_limit),
        )

    yf, yb = _run(build, lens, gx_f, gx_b, whh_f, whh_b)
    return yf, yb


# ------------------------------ parameters -------------------------------------------

def init_params(key, idim, elayers, cdim, hdim):
    params = {"layers": []}
    k = key
    bound = 1.0 / np.sqrt(cdim)
    for l in range(elayers):
        in_dim = idim if l == 0 else 2 * cdim
        layer = {}
        for d in ("fwd", "bwd"):
            k, k1, k2, k3 = jax.random.split(k, 4)
            layer[d] = {
                "w_ih": jax.random.uniform(k1, (in_dim, 4 * cdim), jnp.float32, -bound, bound),
                "w_hh": jax.random.uniform(k2, (cdim, 4 * cdim), jnp.float32, -bound, bound),
                "b":    jax.random.uniform(k3, (1, 4 * cdim), jnp.float32, -bound, bound),
            }
        params["layers"].append(layer)
    k, k1, k2 = jax.random.split(k, 3)
    lb = 1.0 / np.sqrt(2 * cdim)
    params["l_last_w"] = jax.random.uniform(k1, (2 * cdim, hdim), jnp.float32, -lb, lb)
    params["l_last_b"] = jax.random.uniform(k2, (1, hdim), jnp.float32, -lb, lb)
    return params


# ------------------- weight padding (lane-aligned H) + bf16 cast ---------------------
# Padded hidden units provably stay exactly zero: their gate pre-activations are 0
# (zero W columns / bias), so i=f=o=0.5, g=0 -> c stays 0, h = 0.5*tanh(0) = 0, and
# the zero h feeds zero W_ih / W_hh / l_last rows downstream.

def _pad_gate_cols(w, H, Hp):
    """(D, 4H) -> (D, 4Hp): pad each of the 4 gate blocks (i,f,g,o) with zero cols."""
    if Hp == H:
        return w
    parts = [jnp.pad(w[:, j * H:(j + 1) * H], ((0, 0), (0, Hp - H))) for j in range(4)]
    return jnp.concatenate(parts, axis=1)


def _pad_rows(w, H, Hp):
    return w if Hp == H else jnp.pad(w, ((0, Hp - H), (0, 0)))


def _pad_ih_rows_bidir(w, H, Hp):
    """(2H, C) -> (2Hp, C): pad the fwd-half and bwd-half input rows separately."""
    if Hp == H:
        return w
    return jnp.concatenate([_pad_rows(w[:H], H, Hp), _pad_rows(w[H:], H, Hp)], axis=0)


def _prep_params(params, cdim, hdim, Hp, HDp):
    """Pad to lane-aligned hidden sizes and cast MXU operands to bf16 (biases f32).
    In production this would be done once, not per forward call."""
    layers = []
    for li, layer in enumerate(params["layers"]):
        def prep_dir(d):
            w_ih = layer[d]["w_ih"]
            if li > 0:
                w_ih = _pad_ih_rows_bidir(w_ih, cdim, Hp)
            w_ih = _pad_gate_cols(w_ih, cdim, Hp)
            w_hh = _pad_gate_cols(_pad_rows(layer[d]["w_hh"], cdim, Hp), cdim, Hp)
            b = _pad_gate_cols(layer[d]["b"], cdim, Hp)
            return w_ih, w_hh, b
        wf_ih, wf_hh, bf = prep_dir("fwd")
        wb_ih, wb_hh, bb = prep_dir("bwd")
        layers.append({
            # single GEMM RHS producing both directions' gates
            "w_ih": jnp.concatenate([wf_ih, wb_ih], axis=1).astype(jnp.bfloat16),
            "b":    jnp.concatenate([bf, bb], axis=1).astype(jnp.float32),
            "whh_f": wf_hh.astype(jnp.bfloat16),
            "whh_b": wb_hh.astype(jnp.bfloat16),
        })
    lw = _pad_ih_rows_bidir(params["l_last_w"], cdim, Hp)
    lw = jnp.pad(lw, ((0, 0), (0, HDp - hdim)))
    lb = jnp.pad(params["l_last_b"], ((0, 0), (0, HDp - hdim)))
    return layers, lw.astype(jnp.bfloat16), lb.astype(jnp.float32)


# ------------------------------ full forward -----------------------------------------

def blstm_forward(xpad, ilens, params, cdim, hdim, chunk=32, row_tile=512):
    """xpad: (B, T, idim) float32; ilens: 1-D int array (sorted descending)."""
    B, T, idim = xpad.shape
    ilens_np = np.asarray(ilens)
    Tmax = int(ilens_np.max())                   # pad_packed_sequence trims to max len
    chunk = max(1, min(chunk, Tmax))
    Tpad = _round_up(Tmax, chunk)                # padded timesteps stay masked/zero
    Bp = _round_up(B, 16)                        # full-sublane bf16 y stores
    Hp = _round_up(cdim, 128)                    # lane-aligned gate slices
    HDp = _round_up(hdim, 128)                   # lane-dense final projection stores

    layers, lw, lb = _prep_params(params, cdim, hdim, Hp, HDp)

    x = jnp.transpose(xpad[:, :Tmax, :], (1, 0, 2))      # (Tmax, B, idim) time-major
    x = jnp.pad(x, ((0, Tpad - Tmax), (0, Bp - B), (0, 0))).astype(jnp.bfloat16)
    lens = jnp.zeros((Bp, 1), jnp.int32).at[:B, 0].set(
        jnp.asarray(ilens_np, jnp.int32))                # padded batch rows: len 0

    rows = Tpad * Bp
    yf = yb = None
    for li, lp in enumerate(layers):
        if li == 0:
            xs = [x.reshape(rows, idim)]
        else:
            # consume fwd/bwd halves directly -> no HBM concatenate between layers
            xs = [yf.reshape(rows, Hp), yb.reshape(rows, Hp)]
        gx_f, gx_b = fused_linear(xs, lp["w_ih"], lp["b"],
                                  out_cols=[4 * Hp, 4 * Hp],
                                  out_dtype=jnp.bfloat16, row_tile=row_tile)
        gx_f = gx_f.reshape(Tpad, Bp, 4 * Hp)
        gx_b = gx_b.reshape(Tpad, Bp, 4 * Hp)
        yf, yb = bilstm_recurrence(gx_f, gx_b, lp["whh_f"], lp["whh_b"],
                                   lens, Hp, chunk)

    # final projection + tanh, row-tiled, consuming fwd/bwd halves directly
    proj = fused_linear([yf.reshape(rows, Hp), yb.reshape(rows, Hp)],
                        lw, lb, out_cols=[HDp], activation="tanh",
                        out_dtype=jnp.float32, row_tile=row_tile)[0]
    out = proj.reshape(Tpad, Bp, HDp)[:Tmax, :B, :hdim]
    out = jnp.transpose(out, (1, 0, 2))                  # (B, Tmax, hdim)
    return out, ilens


# ------------------------- pure-JAX f32 reference check ------------------------------

def _ref_lstm_dir(x_tbd, lens, w_ih, w_hh, b, reverse):
    T, B, _ = x_tbd.shape
    H = w_hh.shape[0]

    def step(carry, t):
        h, c = carry
        gates = x_tbd[t] @ w_ih + h @ w_hh + b[0]
        i = jax.nn.sigmoid(gates[:, :H])
        f = jax.nn.sigmoid(gates[:, H:2 * H])
        g = jnp.tanh(gates[:, 2 * H:3 * H])
        o = jax.nn.sigmoid(gates[:, 3 * H:])
        c_new = f * c + i * g
        h_new = o * jnp.tanh(c_new)
        m = (t < lens).astype(jnp.float32)[:, None]
        return (m * h_new + (1 - m) * h, m * c_new + (1 - m) * c), m * h_new

    ts = jnp.arange(T)[::-1] if reverse else jnp.arange(T)
    init = (jnp.zeros((B, H), jnp.float32), jnp.zeros((B, H), jnp.float32))
    _, ys = jax.lax.scan(step, init, ts)
    return ys[::-1] if reverse else ys


def _ref_forward(xpad, ilens, params, cdim):
    Tmax = int(np.max(np.asarray(ilens)))
    x_t = jnp.transpose(xpad[:, :Tmax, :], (1, 0, 2))
    lens = jnp.asarray(ilens, jnp.int32)
    h = x_t
    for layer in params["layers"]:
        yf = _ref_lstm_dir(h, lens, layer["fwd"]["w_ih"], layer["fwd"]["w_hh"], layer["fwd"]["b"], False)
        yb = _ref_lstm_dir(h, lens, layer["bwd"]["w_ih"], layer["bwd"]["w_hh"], layer["bwd"]["b"], True)
        h = jnp.concatenate([yf, yb], axis=-1)
    ypad = jnp.transpose(h, (1, 0, 2))
    flat = ypad.reshape(-1, 2 * cdim)
    proj = jnp.tanh(flat @ params["l_last_w"] + params["l_last_b"])
    return proj.reshape(ypad.shape[0], ypad.shape[1], -1)


# ---------------------------------- main ---------------------------------------------

if __name__ == "__main__":
    B, T, idim = 2, 8, 16
    elayers, cdim, hdim = 2, 32, 32
    ilens = np.array([8, 6], dtype=np.int32)      # sorted descending (pack_padded requirement)

    key = jax.random.PRNGKey(0)
    kx, kp = jax.random.split(key)
    xpad = jax.random.normal(kx, (B, T, idim), jnp.float32)
    params = init_params(kp, idim, elayers, cdim, hdim)

    out, out_lens = blstm_forward(xpad, ilens, params, cdim, hdim, chunk=32)
    out = jax.block_until_ready(out)

    ref = _ref_forward(xpad, ilens, params, cdim)
    # bf16 matmul operands / intermediates (f32 accumulation) -> loosened tolerance
    np.testing.assert_allclose(np.asarray(out), np.asarray(ref), rtol=5e-2, atol=5e-2)

    assert out.shape == (B, int(ilens.max()), hdim)
    print("KERNEL_OK")
</pallas_src>

<mosaic_0001>
module attributes {stable_mosaic.version = 11 : i64} {
  func.func @kernel(%arg0: i32, %arg1: memref<128x16xbf16, #tpu.memory_space<vmem>>, %arg2: memref<16x1024xbf16, #tpu.memory_space<vmem>>, %arg3: memref<1x1024xf32, #tpu.memory_space<vmem>>, %arg4: memref<128x512xbf16, #tpu.memory_space<vmem>>, %arg5: memref<128x512xbf16, #tpu.memory_space<vmem>>) attributes {dimension_semantics = [#tpu.dimension_semantics<parallel>], iteration_bounds = array<i64: 1>, scalar_prefetch = 0 : i64, scratch_operands = 0 : i64, tpu.core_type = #tpu.core_type<tc>, window_params = [{transform_indices = @transform_0, window_bounds = array<i64: 128, 16>}, {pipeline_mode = #tpu.pipeline_mode<synchronous>, transform_indices = @transform_1, window_bounds = array<i64: 16, 1024>}, {pipeline_mode = #tpu.pipeline_mode<synchronous>, transform_indices = @transform_2, window_bounds = array<i64: 1, 1024>}, {transform_indices = @transform_3, window_bounds = array<i64: 128, 512>}, {transform_indices = @transform_4, window_bounds = array<i64: 128, 512>}]} {
    %c0 = arith.constant 0 : index
    %c0_0 = arith.constant 0 : index
    %0 = vector.load %arg1[%c0, %c0_0] : memref<128x16xbf16, #tpu.memory_space<vmem>>, vector<128x16xbf16>
    %c0_1 = arith.constant 0 : index
    %c0_2 = arith.constant 0 : index
    %1 = vector.load %arg2[%c0_1, %c0_2] : memref<16x1024xbf16, #tpu.memory_space<vmem>>, vector<16x1024xbf16>
    %cst = arith.constant dense<0.000000e+00> : vector<128x1024xf32>
    %2 = tpu.matmul %0, %1, %cst {dimension_numbers = #tpu.dot_dimension_numbers<[1], [0], [0], [1], [0, 0, 1, 1], [], []>} : vector<128x16xbf16>, vector<16x1024xbf16>, vector<128x1024xf32> -> vector<128x1024xf32>
    %c0_3 = arith.constant 0 : index
    %c0_4 = arith.constant 0 : index
    %3 = vector.load %arg3[%c0_3, %c0_4] : memref<1x1024xf32, #tpu.memory_space<vmem>>, vector<1x1024xf32>
    %4 = vector.broadcast %3 : vector<1x1024xf32> to vector<128x1024xf32>
    %5 = arith.addf %2, %4 : vector<128x1024xf32>
    %6 = vector.extract_strided_slice %5 {offsets = [0, 0], sizes = [128, 512], strides = [1, 1]} : vector<128x1024xf32> to vector<128x512xf32>
    %7 = arith.truncf %6 : vector<128x512xf32> to vector<128x512xbf16>
    %c0_5 = arith.constant 0 : index
    %c0_6 = arith.constant 0 : index
    %8 = vector.load %arg4[%c0_5, %c0_6] : memref<128x512xbf16, #tpu.memory_space<vmem>>, vector<128x512xbf16>
    tpu.vector_store %arg4[%c0_5, %c0_6], %7 {strides = array<i32>} : memref<128x512xbf16, #tpu.memory_space<vmem>>, vector<128x512xbf16>,
    %9 = vector.extract_strided_slice %5 {offsets = [0, 512], sizes = [128, 512], strides = [1, 1]} : vector<128x1024xf32> to vector<128x512xf32>
    %10 = arith.truncf %9 : vector<128x512xf32> to vector<128x512xbf16>
    %c0_7 = arith.constant 0 : index
    %c0_8 = arith.constant 0 : index
    %11 = vector.load %arg5[%c0_7, %c0_8] : memref<128x512xbf16, #tpu.memory_space<vmem>>, vector<128x512xbf16>
    tpu.vector_store %arg5[%c0_7, %c0_8], %10 {strides = array<i32>} : memref<128x512xbf16, #tpu.memory_space<vmem>>, vector<128x512xbf16>,
    return
  }
  func.func @transform_0(%arg0: i32) -> (i32, i32) {
    %c0_i32 = arith.constant 0 : i32
    %c0_i32_0 = arith.constant 0 : i32
    return %arg0, %c0_i32 : i32, i32
  }
  func.func @transform_1(%arg0: i32) -> (i32, i32) {
    %c0_i32 = arith.constant 0 : i32
    %c0_i32_0 = arith.constant 0 : i32
    %c0_i32_1 = arith.constant 0 : i32
    return %c0_i32, %c0_i32_0 : i32, i32
  }
  func.func @transform_2(%arg0: i32) -> (i32, i32) {
    %c0_i32 = arith.constant 0 : i32
    %c0_i32_0 = arith.constant 0 : i32
    %c0_i32_1 = arith.constant 0 : i32
    return %c0_i32, %c0_i32_0 : i32, i32
  }
  func.func @transform_3(%arg0: i32) -> (i32, i32) {
    %c0_i32 = arith.constant 0 : i32
    %c0_i32_0 = arith.constant 0 : i32
    return %arg0, %c0_i32 : i32, i32
  }
  func.func @transform_4(%arg0: i32) -> (i32, i32) {
    %c0_i32 = arith.constant 0 : i32
    %c0_i32_0 = arith.constant 0 : i32
    return %arg0, %c0_i32 : i32, i32
  }
}

module attributes {stable_mosaic.version = 11 : i64} {
  func.func @kernel(%arg0: i32, %arg1: memref<128x16xbf16, #tpu.memory_space<vmem>>, %arg2: memref<16x1024xbf16, #tpu.memory_space<vmem>>, %arg3: memref<1x1024xf32, #tpu.memory_space<vmem>>, %arg4: memref<128x512xbf16, #tpu.memory_space<vmem>>, %arg5: memref<128x512xbf16, #tpu.memory_space<vmem>>) attributes {dimension_semantics = [#tpu.dimension_semantics<parallel>], iteration_bounds = array<i64: 1>, scalar_prefetch = 0 : i64, scratch_operands = 0 : i64, tpu.core_type = #tpu.core_type<tc>, window_params = [{transform_indices = @transform_0, window_bounds = array<i64: 128, 16>}, {pipeline_mode = #tpu.pipeline_mode<synchronous>, transform_indices = @transform_1, window_bounds = array<i64: 16, 1024>}, {pipeline_mode = #tpu.pipeline_mode<synchronous>, transform_indices = @transform_2, window_bounds = array<i64: 1, 1024>}, {transform_indices = @transform_3, window_bounds = array<i64: 128, 512>}, {transform_indices = @transform_4, window_bounds = array<i64: 128, 512>}]} {
    %c0 = arith.constant 0 : index
    %c0_0 = arith.constant 0 : index
    %0 = vector.load %arg1[%c0, %c0_0] : memref<128x16xbf16, #tpu.memory_space<vmem>>, vector<128x16xbf16>
    %c0_1 = arith.constant 0 : index
    %c0_2 = arith.constant 0 : index
    %1 = vector.load %arg2[%c0_1, %c0_2] : memref<16x1024xbf16, #tpu.memory_space<vmem>>, vector<16x1024xbf16>
    %cst = arith.constant dense<0.000000e+00> : vector<128x1024xf32>
    %2 = tpu.matmul %0, %1, %cst {dimension_numbers = #tpu.dot_dimension_numbers<[1], [0], [0], [1], [0, 0, 1, 1], [], []>} : vector<128x16xbf16>, vector<16x1024xbf16>, vector<128x1024xf32> -> vector<128x1024xf32>
    %c0_3 = arith.constant 0 : index
    %c0_4 = arith.constant 0 : index
    %3 = vector.load %arg3[%c0_3, %c0_4] : memref<1x1024xf32, #tpu.memory_space<vmem>>, vector<1x1024xf32>
    %4 = vector.broadcast %3 : vector<1x1024xf32> to vector<128x1024xf32>
    %5 = arith.addf %2, %4 : vector<128x1024xf32>
    %6 = vector.extract_strided_slice %5 {offsets = [0, 0], sizes = [128, 512], strides = [1, 1]} : vector<128x1024xf32> to vector<128x512xf32>
    %7 = arith.truncf %6 : vector<128x512xf32> to vector<128x512xbf16>
    %c0_5 = arith.constant 0 : index
    %c0_6 = arith.constant 0 : index
    %8 = vector.load %arg4[%c0_5, %c0_6] : memref<128x512xbf16, #tpu.memory_space<vmem>>, vector<128x512xbf16>
    tpu.vector_store %arg4[%c0_5, %c0_6], %7 {strides = array<i32>} : memref<128x512xbf16, #tpu.memory_space<vmem>>, vector<128x512xbf16>,
    %9 = vector.extract_strided_slice %5 {offsets = [0, 512], sizes = [128, 512], strides = [1, 1]} : vector<128x1024xf32> to vector<128x512xf32>
    %10 = arith.truncf %9 : vector<128x512xf32> to vector<128x512xbf16>
    %c0_7 = arith.constant 0 : index
    %c0_8 = arith.constant 0 : index
    %11 = vector.load %arg5[%c0_7, %c0_8] : memref<128x512xbf16, #tpu.memory_space<vmem>>, vector<128x512xbf16>
    tpu.vector_store %arg5[%c0_7, %c0_8], %10 {strides = array<i32>} : memref<128x512xbf16, #tpu.memory_space<vmem>>, vector<128x512xbf16>,
    return
  }
  func.func @transform_0(%arg0: i32) -> (i32, i32) {
    %c0_i32 = arith.constant 0 : i32
    %c0_i32_0 = arith.constant 0 : i32
    return %arg0, %c0_i32 : i32, i32
  }
  func.func @transform_1(%arg0: i32) -> (i32, i32) {
    %c0_i32 = arith.constant 0 : i32
    %c0_i32_0 = arith.constant 0 : i32
    %c0_i32_1 = arith.constant 0 : i32
    return %c0_i32, %c0_i32_0 : i32, i32
  }
  func.func @transform_2(%arg0: i32) -> (i32, i32) {
    %c0_i32 = arith.constant 0 : i32
    %c0_i32_0 = arith.constant 0 : i32
    %c0_i32_1 = arith.constant 0 : i32
    return %c0_i32, %c0_i32_0 : i32, i32
  }
  func.func @transform_3(%arg0: i32) -> (i32, i32) {
    %c0_i32 = arith.constant 0 : i32
    %c0_i32_0 = arith.constant 0 : i32
    return %arg0, %c0_i32 : i32, i32
  }
  func.func @transform_4(%arg0: i32) -> (i32, i32) {
    %c0_i32 = arith.constant 0 : i32
    %c0_i32_0 = arith.constant 0 : i32
    return %arg0, %c0_i32 : i32, i32
  }
}

</mosaic_0001>

<bundles_post_ra>
// kernel: tpu_custom_call.1
= control target key start
LH: loop header
LB: loop body
LE: loop exit
PB: predicated region body
PF: predicated region fallthrough
CT: control target
= control target key end

     0   :  { %10 = vsyncpa [#allocation3], 0  ;;  %v1359_v6 = vmov 0   ;;  %vm165_vm0 = vcmask 130048   ;;  %s1705_s0 = inlined_call_operand.vmem [shape: bf16[128,16], index: 0, kind: input, shape index: {}]   ;;  %s1706_s1 = inlined_call_operand.vmem [shape: bf16[16,1024], index: 1, kind: input, shape index: {}]   ;;  %s1707_s2 = inlined_call_operand.vmem [shape: f32[1,1024], index: 2, kind: input, shape index: {}]   ;;  %s1708_s3 = inlined_call_operand.hbm [shape: bf16[128,512], index: 3, kind: output, shape index: {0}]   ;;  %s1709_s4 = inlined_call_operand.hbm [shape: bf16[128,512], index: 4, kind: output, shape index: {1}]  }
   0x1   :  { %v35_v0 = vld [vmem:[%s1706_s1] sm:$0xff]  ;;  %v36_v2 = vld [vmem:[%s1706_s1 + $0x8] sm:$0xff]  ;;  %222 = vmatprep.mubr.bf16.mxu0 %v1359_v6  ;;  %335 = vmatprep.mubr.bf16.mxu1 %v1359_v6  ;;  %v37_v10 = vld [vmem:[%s1706_s1 + $0x10] sm:$0xff] }
   0x2   :  { %v39_v1 = vld [vmem:[%s1706_s1 + $0x20] sm:$0xff]  ;;  %v40_v4 = vld [vmem:[%s1706_s1 + $0x28] sm:$0xff]  ;;  %v41_v11 = vld [vmem:[%s1706_s1 + $0x30] sm:$0xff] }
   0x3   :  { %v1131_v3 = vcombine.high %v35_v0, %v39_v1  ;;  %v1130_v5 = vcombine.low %v35_v0, %v39_v1  ;;  %v1133_v7 = vcombine.high %v36_v2, %v40_v4  ;;  %v1132_v8 = vcombine.low %v36_v2, %v40_v4  ;;  %v1303_v9 = vld [vmem:[%s1705_s0] sm:$0xff]   ;;  %v38_v13 = vld [vmem:[%s1706_s1 + $0x18] sm:$0xff]  ;;  %v1304_v18 = vld [vmem:[%s1705_s0 + $0x8] sm:$0xff]  }
   0x4   :  { %v1135_v12 = vcombine.high %v37_v10, %v41_v11  ;;  %v42_v14 = vld [vmem:[%s1706_s1 + $0x38] sm:$0xff]  ;;  %v1134_v15 = vcombine.low %v37_v10, %v41_v11 }
   0x5   :  { %190 = vmatprep.subr.bf16.mxu0 %v1131_v3  ;;  %303 = vmatprep.subr.bf16.mxu1 %v1133_v7  ;;  %v1137_v16 = vcombine.high %v38_v13, %v42_v14  ;;  %v1136_v17 = vcombine.low %v38_v13, %v42_v14 }
   0x6   :  { %191 = vmatpush1.bf16.msra.mxu0 %v1130_v5  ;;  %304 = vmatpush1.bf16.msra.mxu1 %v1132_v8 }
   0x7   :  { %416 = vmatprep.subr.bf16.mxu0 %v1135_v12  ;;  %529 = vmatprep.subr.bf16.mxu1 %v1137_v16 }
   0x9   :  { %1138 = vmatmul.mubr.msk.bf16.vlgmr.msra.gmra.mrb[0].mxu0 %vm165_vm0, %v1303_v9  ;;  %1146 = vmatmul.mubr.msk.bf16.vlgmr.msra.gmra.mrb[0].mxu1 %vm165_vm0, %v1303_v9 }
   0xa   :  { %417 = vmatpush1.bf16.msra.mxu0 %v1134_v15  ;;  %530 = vmatpush1.bf16.msra.mxu1 %v1136_v17 }
   0xb   :  { %232 = vmatprep.mubr.bf16.mxu0 %v1359_v6  ;;  %345 = vmatprep.mubr.bf16.mxu1 %v1359_v6 }
   0xc   :  { %11 = vsyncpa [#allocation5], 0  ;;  %v1305_v19 = vld [vmem:[%s1705_s0 + $0x10] sm:$0xff]   ;;  %v1306_v20 = vld [vmem:[%s1705_s0 + $0x18] sm:$0xff]   ;;  %v45_v25 = vlaneseq }
   0xd   :  { %v1307_v21 = vld [vmem:[%s1705_s0 + $0x20] sm:$0xff]   ;;  %v1308_v22 = vld [vmem:[%s1705_s0 + $0x28] sm:$0xff]   ;;  %v1309_v23 = vld [vmem:[%s1705_s0 + $0x30] sm:$0xff]  }
   0xe   :  { %v1310_v24 = vld [vmem:[%s1705_s0 + $0x38] sm:$0xff]   ;;  %v1501_v26 = vshrl.u32 %v45_v25, 7  ;;  %v1507_v28 = vld [vmem:[%s1707_s2] sm:$0xff]  ;;  %s1360_s2 = smov [#allocation2]  }
   0xf   :  { %s1095_s21 = sshll.u32 %s1360_s2, 4  ;;  %s1601_s21 = int_to_ptr.vmem [resolvable:$true] %s1095_s21 }
  0x10   :  { %v47_v27 = vsub.s32 0, %v1501_v26  ;;  %v55_v29 = vsub.s32 2, %v1501_v26  ;;  %v51_v30 = vsub.s32 1, %v1501_v26  ;;  %v59_v31 = vsub.s32 3, %v1501_v26  ;;  %s1311_s22 = scalar_lea.vmem %s1601_s21, 4096  ;;  %p1316_p1 = scmp.lt.s32.totalorder %s1601_s21, %s1601_s21 }
  0x11   :  { %1139 = vmatmul.mubr.msk.bf16.gmra.mrb[4].mxu0 %vm165_vm0, %v1304_v18  ;;  %1147 = vmatmul.mubr.msk.bf16.gmra.mrb[4].mxu1 %vm165_vm0, %v1304_v18  ;;  %p1312_p0 = scmp.ne.s32.totalorder %s1601_s21, %s1311_s22  ;;  %p1317_p2 = scmp.lt.s32.totalorder %s1311_s22, %s1311_s22 }
  0x12   :  { %242 = vmatprep.mubr.bf16.mxu0 %v1359_v6  ;;  %355 = vmatprep.mubr.bf16.mxu1 %v1359_v6  ;;  %v1513_v32 = vrot.slane %v1507_v28, %v47_v27  ;;  %v1516_v33 = vrot.slane %v1507_v28, %v55_v29  ;;  %v1519_v34 = vrot.slane %v1507_v28, %v51_v30 }
  0x13   :  { %v1522_v35 = vrot.slane %v1507_v28, %v59_v31  ;;  %p1318_p3 = por %p1317_p2, %p1316_p1 }
  0x15   :  { %p1319_p4 = pnand %p1318_p3, %p1312_p0 }
  0x19   :  { %1140 = vmatmul.mubr.msk.bf16.gmra.mrb[8].mxu0 %vm165_vm0, %v1305_v19  ;;  %1148 = vmatmul.mubr.msk.bf16.gmra.mrb[8].mxu1 %vm165_vm0, %v1305_v19 }
  0x1a   :  { %252 = vmatprep.mubr.bf16.mxu0 %v1359_v6  ;;  %365 = vmatprep.mubr.bf16.mxu1 %v1359_v6 }
  0x21   :  { %1141 = vmatmul.mubr.msk.bf16.gmra.mrb[12].mxu0 %vm165_vm0, %v1306_v20  ;;  %1149 = vmatmul.mubr.msk.bf16.gmra.mrb[12].mxu1 %vm165_vm0, %v1306_v20 }
  0x22   :  { %262 = vmatprep.mubr.bf16.mxu0 %v1359_v6  ;;  %375 = vmatprep.mubr.bf16.mxu1 %v1359_v6 }
  0x29   :  { %1142 = vmatmul.mubr.msk.bf16.gmra.mrb[16].mxu0 %vm165_vm0, %v1307_v21  ;;  %1150 = vmatmul.mubr.msk.bf16.gmra.mrb[16].mxu1 %vm165_vm0, %v1307_v21 }
  0x2a   :  { %272 = vmatprep.mubr.bf16.mxu0 %v1359_v6  ;;  %385 = vmatprep.mubr.bf16.mxu1 %v1359_v6 }
  0x31   :  { %1143 = vmatmul.mubr.msk.bf16.gmra.mrb[20].mxu0 %vm165_vm0, %v1308_v22  ;;  %1151 = vmatmul.mubr.msk.bf16.gmra.mrb[20].mxu1 %vm165_vm0, %v1308_v22 }
  0x32   :  { %282 = vmatprep.mubr.bf16.mxu0 %v1359_v6  ;;  %395 = vmatprep.mubr.bf16.mxu1 %v1359_v6 }
  0x39   :  { %1144 = vmatmul.mubr.msk.bf16.gmra.mrb[24].mxu0 %vm165_vm0, %v1309_v23  ;;  %1152 = vmatmul.mubr.msk.bf16.gmra.mrb[24].mxu1 %vm165_vm0, %v1309_v23 }
  0x3a   :  { %292 = vmatprep.mubr.bf16.mxu0 %v1359_v6  ;;  %405 = vmatprep.mubr.bf16.mxu1 %v1359_v6 }
  0x41   :  { %1145 = vmatmul.mubr.msk.bf16.gmra.mrb[28].mxu0 %vm165_vm0, %v1310_v24  ;;  %1153 = vmatmul.mubr.msk.bf16.gmra.mrb[28].mxu1 %vm165_vm0, %v1310_v24 }
  0x42   :  { %448 = vmatprep.mubr.bf16.mxu0 %v1359_v6  ;;  %561 = vmatprep.mubr.bf16.mxu1 %v1359_v6 }
  0x49   :  { %1154 = vmatmul.mubr.msk.bf16.vlgmr.msra.gmra.mrb[32].mxu0 %vm165_vm0, %v1303_v9  ;;  %1162 = vmatmul.mubr.msk.bf16.vlgmr.msra.gmra.mrb[32].mxu1 %vm165_vm0, %v1303_v9 }
  0x4a   :  { %458 = vmatprep.mubr.bf16.mxu0 %v1359_v6  ;;  %571 = vmatprep.mubr.bf16.mxu1 %v1359_v6 }
  0x51   :  { %1155 = vmatmul.mubr.msk.bf16.gmra.mrb[36].mxu0 %vm165_vm0, %v1304_v18  ;;  %1163 = vmatmul.mubr.msk.bf16.gmra.mrb[36].mxu1 %vm165_vm0, %v1304_v18 }
  0x52   :  { %468 = vmatprep.mubr.bf16.mxu0 %v1359_v6  ;;  %581 = vmatprep.mubr.bf16.mxu1 %v1359_v6 }
  0x59   :  { %1156 = vmatmul.mubr.msk.bf16.gmra.mrb[40].mxu0 %vm165_vm0, %v1305_v19  ;;  %1164 = vmatmul.mubr.msk.bf16.gmra.mrb[40].mxu1 %vm165_vm0, %v1305_v19 }
  0x5a   :  { %478 = vmatprep.mubr.bf16.mxu0 %v1359_v6  ;;  %591 = vmatprep.mubr.bf16.mxu1 %v1359_v6 }
  0x61   :  { %1157 = vmatmul.mubr.msk.bf16.gmra.mrb[44].mxu0 %vm165_vm0, %v1306_v20  ;;  %1165 = vmatmul.mubr.msk.bf16.gmra.mrb[44].mxu1 %vm165_vm0, %v1306_v20 }
  0x62   :  { %488 = vmatprep.mubr.bf16.mxu0 %v1359_v6  ;;  %601 = vmatprep.mubr.bf16.mxu1 %v1359_v6 }
  0x69   :  { %1158 = vmatmul.mubr.msk.bf16.gmra.mrb[48].mxu0 %vm165_vm0, %v1307_v21  ;;  %1166 = vmatmul.mubr.msk.bf16.gmra.mrb[48].mxu1 %vm165_vm0, %v1307_v21 }
  0x6a   :  { %498 = vmatprep.mubr.bf16.mxu0 %v1359_v6  ;;  %611 = vmatprep.mubr.bf16.mxu1 %v1359_v6 }
  0x71   :  { %1159 = vmatmul.mubr.msk.bf16.gmra.mrb[52].mxu0 %vm165_vm0, %v1308_v22  ;;  %1167 = vmatmul.mubr.msk.bf16.gmra.mrb[52].mxu1 %vm165_vm0, %v1308_v22 }
  0x72   :  { %508 = vmatprep.mubr.bf16.mxu0 %v1359_v6  ;;  %621 = vmatprep.mubr.bf16.mxu1 %v1359_v6 }
  0x79   :  { %1160 = vmatmul.mubr.msk.bf16.gmra.mrb[56].mxu0 %vm165_vm0, %v1309_v23  ;;  %1168 = vmatmul.mubr.msk.bf16.gmra.mrb[56].mxu1 %vm165_vm0, %v1309_v23 }
  0x7a   :  { %518 = vmatprep.mubr.bf16.mxu0 %v1359_v6  ;;  %631 = vmatprep.mubr.bf16.mxu1 %v1359_v6 }
  0x81   :  { %1161 = vmatmul.mubr.msk.bf16.gmra.mrb[60].mxu0 %vm165_vm0, %v1310_v24  ;;  %1169 = vmatmul.mubr.msk.bf16.gmra.mrb[60].mxu1 %vm165_vm0, %v1310_v24 }
  0xdc   :  { %v224_v36 = vpop.f32.mrb[0].mxu0  ;;  %v337_v38 = vpop.f32.mrb[0].mxu1 }
  0xdd   :  { %v225_v37 = vadd.f32 %v224_v36, %v1513_v32  ;;  %v226_v39 = vpop.f32.mrb[1].mxu0  ;;  %v338_v40 = vadd.f32 %v337_v38, %v1516_v33  ;;  %v339_v42 = vpop.f32.mrb[1].mxu1 }
  0xde   :  { %v227_v41 = vadd.f32 %v226_v39, %v1519_v34  ;;  %v228_v43 = vpop.f32.mrb[2].mxu0  ;;  %v340_v44 = vadd.f32 %v339_v42, %v1522_v35  ;;  %v341_v46 = vpop.f32.mrb[2].mxu1 }
  0xdf   :  { %v229_v45 = vadd.f32 %v228_v43, %v1513_v32  ;;  %v230_v47 = vpop.f32.mrb[3].mxu0  ;;  %v342_v49 = vadd.f32 %v341_v46, %v1516_v33  ;;  %v343_v51 = vpop.f32.mrb[3].mxu1 }
  0xe0   :  { %v1234_v48 = vpack.c.bf16 %v227_v41, %v225_v37  ;;  %v231_v50 = vadd.f32 %v230_v47, %v1519_v34  ;;  %v1235_v52 = vpack.c.bf16 %v340_v44, %v338_v40  ;;  %v344_v53 = vadd.f32 %v343_v51, %v1522_v35 }
  0xe2   :  { %834 = vst [vmem:[#allocation2] sm:$0xff] %v1234_v48  ;;  %v1236_v54 = vpack.c.bf16 %v231_v50, %v229_v45  ;;  %835 = vst [vmem:[#allocation2 + $0x8] sm:$0xff] %v1235_v52  ;;  %v1237_v55 = vpack.c.bf16 %v344_v53, %v342_v49 }
  0xe4   :  { %836 = vst [vmem:[#allocation2 + $0x10] sm:$0xff] %v1236_v54  ;;  %v234_v56 = vpop.f32.mrb[4].mxu0  ;;  %837 = vst [vmem:[#allocation2 + $0x18] sm:$0xff] %v1237_v55  ;;  %v347_v58 = vpop.f32.mrb[4].mxu1 }
  0xe5   :  { %v235_v57 = vadd.f32 %v234_v56, %v1513_v32  ;;  %v236_v59 = vpop.f32.mrb[5].mxu0  ;;  %v348_v60 = vadd.f32 %v347_v58, %v1516_v33  ;;  %v349_v62 = vpop.f32.mrb[5].mxu1 }
  0xe6   :  { %v237_v61 = vadd.f32 %v236_v59, %v1519_v34  ;;  %v238_v63 = vpop.f32.mrb[6].mxu0  ;;  %v350_v0 = vadd.f32 %v349_v62, %v1522_v35  ;;  %v351_v2 = vpop.f32.mrb[6].mxu1 }
  0xe7   :  { %v239_v1 = vadd.f32 %v238_v63, %v1513_v32  ;;  %v240_v3 = vpop.f32.mrb[7].mxu0  ;;  %v352_v5 = vadd.f32 %v351_v2, %v1516_v33  ;;  %v353_v7 = vpop.f32.mrb[7].mxu1 }
  0xe8   :  { %v1238_v4 = vpack.c.bf16 %v237_v61, %v235_v57  ;;  %v241_v6 = vadd.f32 %v240_v3, %v1519_v34  ;;  %v1239_v8 = vpack.c.bf16 %v350_v0, %v348_v60  ;;  %v354_v9 = vadd.f32 %v353_v7, %v1522_v35 }
  0xea   :  { %838 = vst [vmem:[#allocation2 + $0x20] sm:$0xff] %v1238_v4  ;;  %v1240_v10 = vpack.c.bf16 %v241_v6, %v239_v1  ;;  %839 = vst [vmem:[#allocation2 + $0x28] sm:$0xff] %v1239_v8  ;;  %v1241_v11 = vpack.c.bf16 %v354_v9, %v352_v5 }
  0xec   :  { %840 = vst [vmem:[#allocation2 + $0x30] sm:$0xff] %v1240_v10  ;;  %v244_v12 = vpop.f32.mrb[8].mxu0  ;;  %841 = vst [vmem:[#allocation2 + $0x38] sm:$0xff] %v1241_v11  ;;  %v357_v14 = vpop.f32.mrb[8].mxu1 }
  0xed   :  { %v245_v13 = vadd.f32 %v244_v12, %v1513_v32  ;;  %v246_v15 = vpop.f32.mrb[9].mxu0  ;;  %v358_v16 = vadd.f32 %v357_v14, %v1516_v33  ;;  %v359_v18 = vpop.f32.mrb[9].mxu1 }
  0xee   :  { %v247_v17 = vadd.f32 %v246_v15, %v1519_v34  ;;  %v248_v19 = vpop.f32.mrb[10].mxu0  ;;  %v360_v20 = vadd.f32 %v359_v18, %v1522_v35  ;;  %v361_v22 = vpop.f32.mrb[10].mxu1 }
  0xef   :  { %v249_v21 = vadd.f32 %v248_v19, %v1513_v32  ;;  %v250_v23 = vpop.f32.mrb[11].mxu0  ;;  %v362_v25 = vadd.f32 %v361_v22, %v1516_v33  ;;  %v363_v29 = vpop.f32.mrb[11].mxu1 }
  0xf0   :  { %v1242_v24 = vpack.c.bf16 %v247_v17, %v245_v13  ;;  %v251_v27 = vadd.f32 %v250_v23, %v1519_v34  ;;  %v1243_v30 = vpack.c.bf16 %v360_v20, %v358_v16  ;;  %v364_v31 = vadd.f32 %v363_v29, %v1522_v35 }
  0xf2   :  { %842 = vst [vmem:[#allocation2 + $0x40] sm:$0xff] %v1242_v24  ;;  %v1244_v36 = vpack.c.bf16 %v251_v27, %v249_v21  ;;  %843 = vst [vmem:[#allocation2 + $0x48] sm:$0xff] %v1243_v30  ;;  %v1245_v37 = vpack.c.bf16 %v364_v31, %v362_v25 }
  0xf4   :  { %844 = vst [vmem:[#allocation2 + $0x50] sm:$0xff] %v1244_v36  ;;  %v254_v38 = vpop.f32.mrb[12].mxu0  ;;  %845 = vst [vmem:[#allocation2 + $0x58] sm:$0xff] %v1245_v37  ;;  %v367_v40 = vpop.f32.mrb[12].mxu1 }
  0xf5   :  { %v255_v39 = vadd.f32 %v254_v38, %v1513_v32  ;;  %v256_v41 = vpop.f32.mrb[13].mxu0  ;;  %v368_v42 = vadd.f32 %v367_v40, %v1516_v33  ;;  %v369_v44 = vpop.f32.mrb[13].mxu1 }
  0xf6   :  { %v257_v43 = vadd.f32 %v256_v41, %v1519_v34  ;;  %v258_v45 = vpop.f32.mrb[14].mxu0  ;;  %v370_v46 = vadd.f32 %v369_v44, %v1522_v35  ;;  %v371_v48 = vpop.f32.mrb[14].mxu1 }
  0xf7   :  { %v259_v47 = vadd.f32 %v258_v45, %v1513_v32  ;;  %v260_v49 = vpop.f32.mrb[15].mxu0  ;;  %v372_v51 = vadd.f32 %v371_v48, %v1516_v33  ;;  %v373_v53 = vpop.f32.mrb[15].mxu1 }
  0xf8   :  { %v1246_v50 = vpack.c.bf16 %v257_v43, %v255_v39  ;;  %v261_v52 = vadd.f32 %v260_v49, %v1519_v34  ;;  %v1247_v54 = vpack.c.bf16 %v370_v46, %v368_v42  ;;  %v374_v55 = vadd.f32 %v373_v53, %v1522_v35 }
  0xfa   :  { %846 = vst [vmem:[#allocation2 + $0x60] sm:$0xff] %v1246_v50  ;;  %v1248_v56 = vpack.c.bf16 %v261_v52, %v259_v47  ;;  %847 = vst [vmem:[#allocation2 + $0x68] sm:$0xff] %v1247_v54  ;;  %v1249_v57 = vpack.c.bf16 %v374_v55, %v372_v51 }
  0xfc   :  { %848 = vst [vmem:[#allocation2 + $0x70] sm:$0xff] %v1248_v56  ;;  %v264_v58 = vpop.f32.mrb[16].mxu0  ;;  %849 = vst [vmem:[#allocation2 + $0x78] sm:$0xff] %v1249_v57  ;;  %v377_v60 = vpop.f32.mrb[16].mxu1 }
  0xfd   :  { %v265_v59 = vadd.f32 %v264_v58, %v1513_v32  ;;  %v266_v61 = vpop.f32.mrb[17].mxu0  ;;  %v378_v62 = vadd.f32 %v377_v60, %v1516_v33  ;;  %v379_v0 = vpop.f32.mrb[17].mxu1 }
  0xfe   :  { %v267_v63 = vadd.f32 %v266_v61, %v1519_v34  ;;  %v268_v1 = vpop.f32.mrb[18].mxu0  ;;  %v380_v2 = vadd.f32 %v379_v0, %v1522_v35  ;;  %v381_v4 = vpop.f32.mrb[18].mxu1  ;;  %v63_v0 = vsub.s32 4, %v1501_v26 }
  0xff   :  { %v269_v3 = vadd.f32 %v268_v1, %v1513_v32  ;;  %v270_v5 = vpop.f32.mrb[19].mxu0  ;;  %v382_v7 = vadd.f32 %v381_v4, %v1516_v33  ;;  %v383_v9 = vpop.f32.mrb[19].mxu1 }
 0x100   :  { %v1250_v6 = vpack.c.bf16 %v267_v63, %v265_v59  ;;  %v271_v8 = vadd.f32 %v270_v5, %v1519_v34  ;;  %v1251_v10 = vpack.c.bf16 %v380_v2, %v378_v62  ;;  %v384_v11 = vadd.f32 %v383_v9, %v1522_v35 }
 0x101   :  { %v71_v5 = vsub.s32 6, %v1501_v26 }
 0x102   :  { %850 = vst [vmem:[#allocation2 + $0x80] sm:$0xff] %v1250_v6  ;;  %v1252_v12 = vpack.c.bf16 %v271_v8, %v269_v3  ;;  %851 = vst [vmem:[#allocation2 + $0x88] sm:$0xff] %v1251_v10  ;;  %v1253_v13 = vpack.c.bf16 %v384_v11, %v382_v7  ;;  %v67_v6 = vsub.s32 5, %v1501_v26  ;;  %v75_v11 = vsub.s32 7, %v1501_v26 }
 0x104   :  { %852 = vst [vmem:[#allocation2 + $0x90] sm:$0xff] %v1252_v12  ;;  %v274_v14 = vpop.f32.mrb[20].mxu0  ;;  %853 = vst [vmem:[#allocation2 + $0x98] sm:$0xff] %v1253_v13  ;;  %v387_v16 = vpop.f32.mrb[20].mxu1  ;;  %v1599_v26 = vrot.slane %v1507_v28, %v67_v6 }
 0x105   :  { %v275_v15 = vadd.f32 %v274_v14, %v1513_v32  ;;  %v276_v17 = vpop.f32.mrb[21].mxu0  ;;  %v388_v18 = vadd.f32 %v387_v16, %v1516_v33  ;;  %v389_v20 = vpop.f32.mrb[21].mxu1 }
 0x106   :  { %v277_v19 = vadd.f32 %v276_v17, %v1519_v34  ;;  %v278_v21 = vpop.f32.mrb[22].mxu0  ;;  %v390_v22 = vadd.f32 %v389_v20, %v1522_v35  ;;  %v391_v24 = vpop.f32.mrb[22].mxu1 }
 0x107   :  { %v279_v23 = vadd.f32 %v278_v21, %v1513_v32  ;;  %v280_v25 = vpop.f32.mrb[23].mxu0  ;;  %v392_v29 = vadd.f32 %v391_v24, %v1516_v33  ;;  %v393_v31 = vpop.f32.mrb[23].mxu1 }
 0x108   :  { %v1254_v27 = vpack.c.bf16 %v277_v19, %v275_v15  ;;  %v281_v30 = vadd.f32 %v280_v25, %v1519_v34  ;;  %v1255_v36 = vpack.c.bf16 %v390_v22, %v388_v18  ;;  %v394_v37 = vadd.f32 %v393_v31, %v1522_v35 }
 0x109   :  { %v1593_v18 = vrot.slane %v1507_v28, %v63_v0  ;;  %v1596_v19 = vrot.slane %v1507_v28, %v71_v5 }
 0x10a   :  { %854 = vst [vmem:[#allocation2 + $0xa0] sm:$0xff] %v1254_v27  ;;  %v1256_v38 = vpack.c.bf16 %v281_v30, %v279_v23  ;;  %855 = vst [vmem:[#allocation2 + $0xa8] sm:$0xff] %v1255_v36  ;;  %v1257_v39 = vpack.c.bf16 %v394_v37, %v392_v29 }
 0x10c   :  { %856 = vst [vmem:[#allocation2 + $0xb0] sm:$0xff] %v1256_v38  ;;  %v284_v40 = vpop.f32.mrb[24].mxu0  ;;  %857 = vst [vmem:[#allocation2 + $0xb8] sm:$0xff] %v1257_v39  ;;  %v397_v42 = vpop.f32.mrb[24].mxu1 }
 0x10d   :  { %v285_v41 = vadd.f32 %v284_v40, %v1513_v32  ;;  %v286_v43 = vpop.f32.mrb[25].mxu0  ;;  %v398_v44 = vadd.f32 %v397_v42, %v1516_v33  ;;  %v399_v46 = vpop.f32.mrb[25].mxu1 }
 0x10e   :  { %v287_v45 = vadd.f32 %v286_v43, %v1519_v34  ;;  %v288_v47 = vpop.f32.mrb[26].mxu0  ;;  %v400_v48 = vadd.f32 %v399_v46, %v1522_v35  ;;  %v401_v50 = vpop.f32.mrb[26].mxu1 }
 0x10f   :  { %v289_v49 = vadd.f32 %v288_v47, %v1513_v32  ;;  %v290_v51 = vpop.f32.mrb[27].mxu0  ;;  %v402_v53 = vadd.f32 %v401_v50, %v1516_v33  ;;  %v403_v55 = vpop.f32.mrb[27].mxu1 }
 0x110   :  { %v1258_v52 = vpack.c.bf16 %v287_v45, %v285_v41  ;;  %v291_v54 = vadd.f32 %v290_v51, %v1519_v34  ;;  %v1259_v56 = vpack.c.bf16 %v400_v48, %v398_v44  ;;  %v404_v57 = vadd.f32 %v403_v55, %v1522_v35 }
 0x112   :  { %858 = vst [vmem:[#allocation2 + $0xc0] sm:$0xff] %v1258_v52  ;;  %v1260_v58 = vpack.c.bf16 %v291_v54, %v289_v49  ;;  %859 = vst [vmem:[#allocation2 + $0xc8] sm:$0xff] %v1259_v56  ;;  %v1261_v59 = vpack.c.bf16 %v404_v57, %v402_v53 }
 0x114   :  { %860 = vst [vmem:[#allocation2 + $0xd0] sm:$0xff] %v1260_v58  ;;  %v294_v60 = vpop.f32.mrb[28].mxu0  ;;  %861 = vst [vmem:[#allocation2 + $0xd8] sm:$0xff] %v1261_v59  ;;  %v407_v62 = vpop.f32.mrb[28].mxu1 }
 0x115   :  { %v295_v61 = vadd.f32 %v294_v60, %v1513_v32  ;;  %v296_v63 = vpop.f32.mrb[29].mxu0  ;;  %v408_v1 = vadd.f32 %v407_v62, %v1516_v33  ;;  %v409_v3 = vpop.f32.mrb[29].mxu1 }
 0x116   :  { %v297_v2 = vadd.f32 %v296_v63, %v1519_v34  ;;  %v298_v4 = vpop.f32.mrb[30].mxu0  ;;  %v410_v7 = vadd.f32 %v409_v3, %v1522_v35  ;;  %v411_v9 = vpop.f32.mrb[30].mxu1 }
 0x117   :  { %v299_v8 = vadd.f32 %v298_v4, %v1513_v32  ;;  %v300_v10 = vpop.f32.mrb[31].mxu0  ;;  %v412_v13 = vadd.f32 %v411_v9, %v1516_v33  ;;  %v413_v15 = vpop.f32.mrb[31].mxu1 }
 0x118   :  { %v1262_v12 = vpack.c.bf16 %v297_v2, %v295_v61  ;;  %v301_v14 = vadd.f32 %v300_v10, %v1519_v34  ;;  %v1263_v16 = vpack.c.bf16 %v410_v7, %v408_v1  ;;  %v414_v17 = vadd.f32 %v413_v15, %v1522_v35 }
 0x119   :  { %v1604_v34 = vrot.slane %v1507_v28, %v75_v11 }
 0x11a   :  { %862 = vst [vmem:[#allocation2 + $0xe0] sm:$0xff] %v1262_v12  ;;  %v1264_v32 = vpack.c.bf16 %v301_v14, %v299_v8  ;;  %863 = vst [vmem:[#allocation2 + $0xe8] sm:$0xff] %v1263_v16  ;;  %v1265_v33 = vpack.c.bf16 %v414_v17, %v412_v13 }
 0x11c   :  { %864 = vst [vmem:[#allocation2 + $0xf0] sm:$0xff] %v1264_v32  ;;  %v450_v35 = vpop.f32.mrb[32].mxu0  ;;  %865 = vst [vmem:[#allocation2 + $0xf8] sm:$0xff] %v1265_v33  ;;  %v563_v21 = vpop.f32.mrb[32].mxu1 }
 0x11d   :  { %v451_v20 = vadd.f32 %v450_v35, %v1593_v18  ;;  %v452_v22 = vpop.f32.mrb[33].mxu0  ;;  %v564_v23 = vadd.f32 %v563_v21, %v1596_v19  ;;  %v565_v25 = vpop.f32.mrb[33].mxu1 }
 0x11e   :  { %v453_v24 = vadd.f32 %v452_v22, %v1599_v26  ;;  %v454_v27 = vpop.f32.mrb[34].mxu0 }
 0x11f   :  { %1322 = shalt.err (!%p1319_p4)
}
 0x120   :  { %s1323_s25 = scalar_lea.hbm %s1708_s3, 4096 }
 0x121   :  { %p1324_p5 = scmp.ne.s32.totalorder %s1708_s3, %s1323_s25  ;;  %p1327_p6 = scmp.lt.u32.totalorder %s1323_s25, %s1708_s3 }
 0x123   :  { %p1329_p7 = pnand %p1327_p6, %p1324_p5 }
 0x125   :  { %1332 = shalt.err (!%p1329_p7)
}
 0x126   :  { %s1361_s30 = smov 256   ;;  %s1362_s5 = smov 16   ;;  %v566_v28 = vadd.f32 %v565_v25, %v1604_v34  ;;  %v455_v29 = vadd.f32 %v454_v27, %v1593_v18  ;;  %v567_v30 = vpop.f32.mrb[34].mxu1  ;;  %v456_v31 = vpop.f32.mrb[35].mxu0  ;;  %v1266_v36 = vpack.c.bf16 %v453_v24, %v451_v20 }
 0x127   :  { %1101 = dma.vmem_to_hbm [thread:$0]  %s1601_s21, 4096, %s1708_s3, [#allocation3], %s1361_s30, %s1361_s30, %s1362_s5   ;;  %v568_v37 = vadd.f32 %v567_v30, %v1596_v19  ;;  %v457_v38 = vadd.f32 %v456_v31, %v1599_v26  ;;  %v569_v39 = vpop.f32.mrb[35].mxu1  ;;  %v460_v44 = vpop.f32.mrb[36].mxu0 }
 0x128   :  { %v1267_v40 = vpack.c.bf16 %v566_v28, %v564_v23  ;;  %v570_v41 = vadd.f32 %v569_v39, %v1604_v34  ;;  %1058 = vst [vmem:[#allocation4] sm:$0xff] %v1266_v36  ;;  %v461_v45 = vadd.f32 %v460_v44, %v1593_v18  ;;  %v573_v46 = vpop.f32.mrb[36].mxu1  ;;  %v462_v47 = vpop.f32.mrb[37].mxu0  ;;  %s1363_s3 = smov [#allocation4]  }
 0x129   :  { %v1268_v42 = vpack.c.bf16 %v457_v38, %v455_v29  ;;  %v574_v48 = vadd.f32 %v573_v46, %v1596_v19  ;;  %v463_v49 = vadd.f32 %v462_v47, %v1599_v26  ;;  %v575_v50 = vpop.f32.mrb[37].mxu1  ;;  %v464_v51 = vpop.f32.mrb[38].mxu0  ;;  %s1107_s7 = sshll.u32 %s1363_s3, 4  ;;  %s1108_s7 = int_to_ptr.vmem [resolvable:$true] %s1107_s7 }
 0x12a   :  { %1059 = vst [vmem:[#allocation4 + $0x8] sm:$0xff] %v1267_v40  ;;  %v1269_v43 = vpack.c.bf16 %v570_v41, %v568_v37  ;;  %v576_v52 = vadd.f32 %v575_v50, %v1604_v34  ;;  %v465_v53 = vadd.f32 %v464_v51, %v1593_v18  ;;  %v577_v54 = vpop.f32.mrb[38].mxu1  ;;  %v466_v55 = vpop.f32.mrb[39].mxu0  ;;  %s1333_s8 = scalar_lea.vmem %s1108_s7, 4096  ;;  %p1338_p9 = scmp.lt.s32.totalorder %s1108_s7, %s1108_s7 }
 0x12b   :  { %1060 = vst [vmem:[#allocation4 + $0x10] sm:$0xff] %v1268_v42  ;;  %v1270_v56 = vpack.c.bf16 %v463_v49, %v461_v45  ;;  %v578_v57 = vadd.f32 %v577_v54, %v1596_v19  ;;  %v467_v58 = vadd.f32 %v466_v55, %v1599_v26  ;;  %v579_v59 = vpop.f32.mrb[39].mxu1  ;;  %p1334_p8 = scmp.ne.s32.totalorder %s1108_s7, %s1333_s8  ;;  %p1339_p10 = scmp.lt.s32.totalorder %s1333_s8, %s1333_s8 }
 0x12c   :  { %1061 = vst [vmem:[#allocation4 + $0x18] sm:$0xff] %v1269_v43  ;;  %v1271_v60 = vpack.c.bf16 %v576_v52, %v574_v48  ;;  %v580_v61 = vadd.f32 %v579_v59, %v1604_v34  ;;  %v470_v0 = vpop.f32.mrb[40].mxu0  ;;  %v583_v2 = vpop.f32.mrb[40].mxu1 }
 0x12d   :  { %1062 = vst [vmem:[#allocation4 + $0x20] sm:$0xff] %v1270_v56  ;;  %v1272_v62 = vpack.c.bf16 %v467_v58, %v465_v53  ;;  %v471_v1 = vadd.f32 %v470_v0, %v1593_v18  ;;  %v472_v3 = vpop.f32.mrb[41].mxu0  ;;  %v584_v4 = vadd.f32 %v583_v2, %v1596_v19  ;;  %v585_v6 = vpop.f32.mrb[41].mxu1  ;;  %p1340_p11 = por %p1339_p10, %p1338_p9 }
 0x12e   :  { %1063 = vst [vmem:[#allocation4 + $0x28] sm:$0xff] %v1271_v60  ;;  %v1273_v63 = vpack.c.bf16 %v580_v61, %v578_v57  ;;  %v473_v5 = vadd.f32 %v472_v3, %v1599_v26  ;;  %v474_v7 = vpop.f32.mrb[42].mxu0  ;;  %v586_v8 = vadd.f32 %v585_v6, %v1604_v34  ;;  %v587_v10 = vpop.f32.mrb[42].mxu1 }
 0x12f   :  { %1064 = vst [vmem:[#allocation4 + $0x30] sm:$0xff] %v1272_v62  ;;  %v475_v9 = vadd.f32 %v474_v7, %v1593_v18  ;;  %v476_v11 = vpop.f32.mrb[43].mxu0  ;;  %v588_v13 = vadd.f32 %v587_v10, %v1596_v19  ;;  %v589_v15 = vpop.f32.mrb[43].mxu1  ;;  %p1341_p12 = pnand %p1340_p11, %p1334_p8 }
 0x130   :  { %1065 = vst [vmem:[#allocation4 + $0x38] sm:$0xff] %v1273_v63  ;;  %v1274_v12 = vpack.c.bf16 %v473_v5, %v471_v1  ;;  %v477_v14 = vadd.f32 %v476_v11, %v1599_v26  ;;  %v1275_v16 = vpack.c.bf16 %v586_v8, %v584_v4  ;;  %v590_v17 = vadd.f32 %v589_v15, %v1604_v34 }
 0x132   :  { %1066 = vst [vmem:[#allocation4 + $0x40] sm:$0xff] %v1274_v12  ;;  %v1276_v32 = vpack.c.bf16 %v477_v14, %v475_v9  ;;  %1067 = vst [vmem:[#allocation4 + $0x48] sm:$0xff] %v1275_v16  ;;  %v1277_v33 = vpack.c.bf16 %v590_v17, %v588_v13 }
 0x134   :  { %1068 = vst [vmem:[#allocation4 + $0x50] sm:$0xff] %v1276_v32  ;;  %v480_v35 = vpop.f32.mrb[44].mxu0  ;;  %1069 = vst [vmem:[#allocation4 + $0x58] sm:$0xff] %v1277_v33  ;;  %v593_v21 = vpop.f32.mrb[44].mxu1 }
 0x135   :  { %v481_v20 = vadd.f32 %v480_v35, %v1593_v18  ;;  %v482_v22 = vpop.f32.mrb[45].mxu0  ;;  %v594_v23 = vadd.f32 %v593_v21, %v1596_v19  ;;  %v595_v25 = vpop.f32.mrb[45].mxu1 }
 0x136   :  { %v483_v24 = vadd.f32 %v482_v22, %v1599_v26  ;;  %v484_v27 = vpop.f32.mrb[46].mxu0  ;;  %v596_v28 = vadd.f32 %v595_v25, %v1604_v34  ;;  %v597_v30 = vpop.f32.mrb[46].mxu1 }
 0x137   :  { %v485_v29 = vadd.f32 %v484_v27, %v1593_v18  ;;  %v486_v31 = vpop.f32.mrb[47].mxu0  ;;  %v598_v37 = vadd.f32 %v597_v30, %v1596_v19  ;;  %v599_v39 = vpop.f32.mrb[47].mxu1 }
 0x138   :  { %v1278_v36 = vpack.c.bf16 %v483_v24, %v481_v20  ;;  %v487_v38 = vadd.f32 %v486_v31, %v1599_v26  ;;  %v1279_v40 = vpack.c.bf16 %v596_v28, %v594_v23  ;;  %v600_v41 = vadd.f32 %v599_v39, %v1604_v34 }
 0x13a   :  { %1070 = vst [vmem:[#allocation4 + $0x60] sm:$0xff] %v1278_v36  ;;  %v1280_v42 = vpack.c.bf16 %v487_v38, %v485_v29  ;;  %1071 = vst [vmem:[#allocation4 + $0x68] sm:$0xff] %v1279_v40  ;;  %v1281_v43 = vpack.c.bf16 %v600_v41, %v598_v37 }
 0x13c   :  { %1072 = vst [vmem:[#allocation4 + $0x70] sm:$0xff] %v1280_v42  ;;  %v490_v44 = vpop.f32.mrb[48].mxu0  ;;  %1073 = vst [vmem:[#allocation4 + $0x78] sm:$0xff] %v1281_v43  ;;  %v603_v46 = vpop.f32.mrb[48].mxu1 }
 0x13d   :  { %v491_v45 = vadd.f32 %v490_v44, %v1593_v18  ;;  %v492_v47 = vpop.f32.mrb[49].mxu0  ;;  %v604_v48 = vadd.f32 %v603_v46, %v1596_v19  ;;  %v605_v50 = vpop.f32.mrb[49].mxu1 }
 0x13e   :  { %v493_v49 = vadd.f32 %v492_v47, %v1599_v26  ;;  %v494_v51 = vpop.f32.mrb[50].mxu0  ;;  %v606_v52 = vadd.f32 %v605_v50, %v1604_v34  ;;  %v607_v54 = vpop.f32.mrb[50].mxu1 }
 0x13f   :  { %v495_v53 = vadd.f32 %v494_v51, %v1593_v18  ;;  %v496_v55 = vpop.f32.mrb[51].mxu0  ;;  %v608_v57 = vadd.f32 %v607_v54, %v1596_v19  ;;  %v609_v59 = vpop.f32.mrb[51].mxu1 }
 0x140   :  { %v1282_v56 = vpack.c.bf16 %v493_v49, %v491_v45  ;;  %v497_v58 = vadd.f32 %v496_v55, %v1599_v26  ;;  %v1283_v60 = vpack.c.bf16 %v606_v52, %v604_v48  ;;  %v610_v61 = vadd.f32 %v609_v59, %v1604_v34 }
 0x142   :  { %1074 = vst [vmem:[#allocation4 + $0x80] sm:$0xff] %v1282_v56  ;;  %v1284_v62 = vpack.c.bf16 %v497_v58, %v495_v53  ;;  %1075 = vst [vmem:[#allocation4 + $0x88] sm:$0xff] %v1283_v60  ;;  %v1285_v63 = vpack.c.bf16 %v610_v61, %v608_v57 }
 0x144   :  { %1076 = vst [vmem:[#allocation4 + $0x90] sm:$0xff] %v1284_v62  ;;  %v500_v0 = vpop.f32.mrb[52].mxu0  ;;  %1077 = vst [vmem:[#allocation4 + $0x98] sm:$0xff] %v1285_v63  ;;  %v613_v2 = vpop.f32.mrb[52].mxu1 }
 0x145   :  { %v501_v1 = vadd.f32 %v500_v0, %v1593_v18  ;;  %v502_v3 = vpop.f32.mrb[53].mxu0  ;;  %v614_v4 = vadd.f32 %v613_v2, %v1596_v19  ;;  %v615_v6 = vpop.f32.mrb[53].mxu1 }
 0x146   :  { %v503_v5 = vadd.f32 %v502_v3, %v1599_v26  ;;  %v504_v7 = vpop.f32.mrb[54].mxu0  ;;  %v616_v8 = vadd.f32 %v615_v6, %v1604_v34  ;;  %v617_v10 = vpop.f32.mrb[54].mxu1 }
 0x147   :  { %v505_v9 = vadd.f32 %v504_v7, %v1593_v18  ;;  %v506_v11 = vpop.f32.mrb[55].mxu0  ;;  %v618_v13 = vadd.f32 %v617_v10, %v1596_v19  ;;  %v619_v15 = vpop.f32.mrb[55].mxu1 }
 0x148   :  { %v1286_v12 = vpack.c.bf16 %v503_v5, %v501_v1  ;;  %v507_v14 = vadd.f32 %v506_v11, %v1599_v26  ;;  %v1287_v16 = vpack.c.bf16 %v616_v8, %v614_v4  ;;  %v620_v17 = vadd.f32 %v619_v15, %v1604_v34 }
 0x14a   :  { %1078 = vst [vmem:[#allocation4 + $0xa0] sm:$0xff] %v1286_v12  ;;  %v1288_v32 = vpack.c.bf16 %v507_v14, %v505_v9  ;;  %1079 = vst [vmem:[#allocation4 + $0xa8] sm:$0xff] %v1287_v16  ;;  %v1289_v33 = vpack.c.bf16 %v620_v17, %v618_v13 }
 0x14c   :  { %1080 = vst [vmem:[#allocation4 + $0xb0] sm:$0xff] %v1288_v32  ;;  %v510_v35 = vpop.f32.mrb[56].mxu0  ;;  %1081 = vst [vmem:[#allocation4 + $0xb8] sm:$0xff] %v1289_v33  ;;  %v623_v21 = vpop.f32.mrb[56].mxu1 }
 0x14d   :  { %v511_v20 = vadd.f32 %v510_v35, %v1593_v18  ;;  %v512_v22 = vpop.f32.mrb[57].mxu0  ;;  %v624_v23 = vadd.f32 %v623_v21, %v1596_v19  ;;  %v625_v25 = vpop.f32.mrb[57].mxu1 }
 0x14e   :  { %v513_v24 = vadd.f32 %v512_v22, %v1599_v26  ;;  %v514_v27 = vpop.f32.mrb[58].mxu0  ;;  %v626_v28 = vadd.f32 %v625_v25, %v1604_v34  ;;  %v627_v30 = vpop.f32.mrb[58].mxu1 }
 0x14f   :  { %v515_v29 = vadd.f32 %v514_v27, %v1593_v18  ;;  %v516_v31 = vpop.f32.mrb[59].mxu0  ;;  %v628_v37 = vadd.f32 %v627_v30, %v1596_v19  ;;  %v629_v39 = vpop.f32.mrb[59].mxu1 }
 0x150   :  { %v1290_v36 = vpack.c.bf16 %v513_v24, %v511_v20  ;;  %v517_v38 = vadd.f32 %v516_v31, %v1599_v26  ;;  %v1291_v40 = vpack.c.bf16 %v626_v28, %v624_v23  ;;  %v630_v41 = vadd.f32 %v629_v39, %v1604_v34 }
 0x152   :  { %1082 = vst [vmem:[#allocation4 + $0xc0] sm:$0xff] %v1290_v36  ;;  %v1292_v42 = vpack.c.bf16 %v517_v38, %v515_v29  ;;  %1083 = vst [vmem:[#allocation4 + $0xc8] sm:$0xff] %v1291_v40  ;;  %v1293_v43 = vpack.c.bf16 %v630_v41, %v628_v37 }
 0x154   :  { %1084 = vst [vmem:[#allocation4 + $0xd0] sm:$0xff] %v1292_v42  ;;  %v520_v44 = vpop.f32.mrb[60].mxu0  ;;  %1085 = vst [vmem:[#allocation4 + $0xd8] sm:$0xff] %v1293_v43  ;;  %v633_v46 = vpop.f32.mrb[60].mxu1 }
 0x155   :  { %v521_v45 = vadd.f32 %v520_v44, %v1593_v18  ;;  %v522_v47 = vpop.f32.mrb[61].mxu0  ;;  %v634_v48 = vadd.f32 %v633_v46, %v1596_v19  ;;  %v635_v50 = vpop.f32.mrb[61].mxu1 }
 0x156   :  { %v523_v49 = vadd.f32 %v522_v47, %v1599_v26  ;;  %v524_v51 = vpop.f32.mrb[62].mxu0  ;;  %v636_v52 = vadd.f32 %v635_v50, %v1604_v34  ;;  %v637_v54 = vpop.f32.mrb[62].mxu1 }
 0x157   :  { %v525_v53 = vadd.f32 %v524_v51, %v1593_v18  ;;  %v526_v55 = vpop.f32.mrb[63].mxu0  ;;  %v638_v57 = vadd.f32 %v637_v54, %v1596_v19  ;;  %v639_v59 = vpop.f32.mrb[63].mxu1 }
 0x158   :  { %v1294_v56 = vpack.c.bf16 %v523_v49, %v521_v45  ;;  %v527_v58 = vadd.f32 %v526_v55, %v1599_v26  ;;  %v1295_v60 = vpack.c.bf16 %v636_v52, %v634_v48  ;;  %v640_v61 = vadd.f32 %v639_v59, %v1604_v34 }
 0x15a   :  { %1086 = vst [vmem:[#allocation4 + $0xe0] sm:$0xff] %v1294_v56  ;;  %v1296_v62 = vpack.c.bf16 %v527_v58, %v525_v53  ;;  %1087 = vst [vmem:[#allocation4 + $0xe8] sm:$0xff] %v1295_v60  ;;  %v1297_v63 = vpack.c.bf16 %v640_v61, %v638_v57 }
 0x15c   :  { %1088 = vst [vmem:[#allocation4 + $0xf0] sm:$0xff] %v1296_v62  ;;  %1089 = vst [vmem:[#allocation4 + $0xf8] sm:$0xff] %v1297_v63 }
 0x15d   :  { %1344 = shalt.err (!%p1341_p12)
}
 0x15e   :  { %s1345_s11 = scalar_lea.hbm %s1709_s4, 4096 }
 0x15f   :  { %p1346_p13 = scmp.ne.s32.totalorder %s1709_s4, %s1345_s11  ;;  %p1349_p0 = scmp.lt.u32.totalorder %s1345_s11, %s1709_s4 }
 0x161   :  { %p1351_p1 = pnand %p1349_p0, %p1346_p13 }
 0x163   :  { %1354 = shalt.err (!%p1351_p1)
}
 0x164   :  { %1113 = dma.vmem_to_hbm [thread:$0]  %s1108_s7, 4096, %s1709_s4, [#allocation5], %s1361_s30, %s1361_s30, %s1362_s5  }
 0x165   :  { %1355 = dma.done.wait [#allocation3], 4096  }
 0x166   :  { %1356 = vsyncadd [#allocation3], 4294963200 }
 0x167   :  { %1357 = dma.done.wait [#allocation5], 4096  }
 0x168   :  { %1358 = vsyncadd [#allocation5], 4294963200 }
 0x169   :  { %1120 = vsyncpa [#allocation3], 1 }
 0x16a   :  { %1121 = vsyncpa [#allocation5], 1 }

// kernel: tpu_custom_call.1
= control target key start
LH: loop header
LB: loop body
LE: loop exit
PB: predicated region body
PF: predicated region fallthrough
CT: control target
= control target key end

     0   :  { %10 = vsyncpa [#allocation3], 0  ;;  %v1359_v6 = vmov 0   ;;  %vm165_vm0 = vcmask 130048   ;;  %s1705_s0 = inlined_call_operand.vmem [shape: bf16[128,16], index: 0, kind: input, shape index: {}]   ;;  %s1706_s1 = inlined_call_operand.vmem [shape: bf16[16,1024], index: 1, kind: input, shape index: {}]   ;;  %s1707_s2 = inlined_call_operand.vmem [shape: f32[1,1024], index: 2, kind: input, shape index: {}]   ;;  %s1708_s3 = inlined_call_operand.hbm [shape: bf16[128,512], index: 3, kind: output, shape index: {0}]   ;;  %s1709_s4 = inlined_call_operand.hbm [shape: bf16[128,512], index: 4, kind: output, shape index: {1}]  }
   0x1   :  { %v35_v0 = vld [vmem:[%s1706_s1] sm:$0xff]  ;;  %v36_v2 = vld [vmem:[%s1706_s1 + $0x8] sm:$0xff]  ;;  %222 = vmatprep.mubr.bf16.mxu0 %v1359_v6  ;;  %335 = vmatprep.mubr.bf16.mxu1 %v1359_v6  ;;  %v37_v10 = vld [vmem:[%s1706_s1 + $0x10] sm:$0xff] }
   0x2   :  { %v39_v1 = vld [vmem:[%s1706_s1 + $0x20] sm:$0xff]  ;;  %v40_v4 = vld [vmem:[%s1706_s1 + $0x28] sm:$0xff]  ;;  %v41_v11 = vld [vmem:[%s1706_s1 + $0x30] sm:$0xff] }
   0x3   :  { %v1131_v3 = vcombine.high %v35_v0, %v39_v1  ;;  %v1130_v5 = vcombine.low %v35_v0, %v39_v1  ;;  %v1133_v7 = vcombine.high %v36_v2, %v40_v4  ;;  %v1132_v8 = vcombine.low %v36_v2, %v40_v4  ;;  %v1303_v9 = vld [vmem:[%s1705_s0] sm:$0xff]   ;;  %v38_v13 = vld [vmem:[%s1706_s1 + $0x18] sm:$0xff]  ;;  %v1304_v18 = vld [vmem:[%s1705_s0 + $0x8] sm:$0xff]  }
   0x4   :  { %v1135_v12 = vcombine.high %v37_v10, %v41_v11  ;;  %v42_v14 = vld [vmem:[%s1706_s1 + $0x38] sm:$0xff]  ;;  %v1134_v15 = vcombine.low %v37_v10, %v41_v11 }
   0x5   :  { %190 = vmatprep.subr.bf16.mxu0 %v1131_v3  ;;  %303 = vmatprep.subr.bf16.mxu1 %v1133_v7  ;;  %v1137_v16 = vcombine.high %v38_v13, %v42_v14  ;;  %v1136_v17 = vcombine.low %v38_v13, %v42_v14 }
   0x6   :  { %191 = vmatpush1.bf16.msra.mxu0 %v1130_v5  ;;  %304 = vmatpush1.bf16.msra.mxu1 %v1132_v8 }
   0x7   :  { %416 = vmatprep.subr.bf16.mxu0 %v1135_v12  ;;  %529 = vmatprep.subr.bf16.mxu1 %v1137_v16 }
   0x9   :  { %1138 = vmatmul.mubr.msk.bf16.vlgmr.msra.gmra.mrb[0].mxu0 %vm165_vm0, %v1303_v9  ;;  %1146 = vmatmul.mubr.msk.bf16.vlgmr.msra.gmra.mrb[0].mxu1 %vm165_vm0, %v1303_v9 }
   0xa   :  { %417 = vmatpush1.bf16.msra.mxu0 %v1134_v15  ;;  %530 = vmatpush1.bf16.msra.mxu1 %v1136_v17 }
   0xb   :  { %232 = vmatprep.mubr.bf16.mxu0 %v1359_v6  ;;  %345 = vmatprep.mubr.bf16.mxu1 %v1359_v6 }
   0xc   :  { %11 = vsyncpa [#allocation5], 0  ;;  %v1305_v19 = vld [vmem:[%s1705_s0 + $0x10] sm:$0xff]   ;;  %v1306_v20 = vld [vmem:[%s1705_s0 + $0x18] sm:$0xff]   ;;  %v45_v25 = vlaneseq }
   0xd   :  { %v1307_v21 = vld [vmem:[%s1705_s0 + $0x20] sm:$0xff]   ;;  %v1308_v22 = vld [vmem:[%s1705_s0 + $0x28] sm:$0xff]   ;;  %v1309_v23 = vld [vmem:[%s1705_s0 + $0x30] sm:$0xff]  }
   0xe   :  { %v1310_v24 = vld [vmem:[%s1705_s0 + $0x38] sm:$0xff]   ;;  %v1501_v26 = vshrl.u32 %v45_v25, 7  ;;  %v1507_v28 = vld [vmem:[%s1707_s2] sm:$0xff]  ;;  %s1360_s2 = smov [#allocation2]  }
   0xf   :  { %s1095_s21 = sshll.u32 %s1360_s2, 4  ;;  %s1601_s21 = int_to_ptr.vmem [resolvable:$true] %s1095_s21 }
  0x10   :  { %v47_v27 = vsub.s32 0, %v1501_v26  ;;  %v55_v29 = vsub.s32 2, %v1501_v26  ;;  %v51_v30 = vsub.s32 1, %v1501_v26  ;;  %v59_v31 = vsub.s32 3, %v1501_v26  ;;  %s1311_s22 = scalar_lea.vmem %s1601_s21, 4096  ;;  %p1316_p1 = scmp.lt.s32.totalorder %s1601_s21, %s1601_s21 }
  0x11   :  { %1139 = vmatmul.mubr.msk.bf16.gmra.mrb[4].mxu0 %vm165_vm0, %v1304_v18  ;;  %1147 = vmatmul.mubr.msk.bf16.gmra.mrb[4].mxu1 %vm165_vm0, %v1304_v18  ;;  %p1312_p0 = scmp.ne.s32.totalorder %s1601_s21, %s1311_s22  ;;  %p1317_p2 = scmp.lt.s32.totalorder %s1311_s22, %s1311_s22 }
  0x12   :  { %242 = vmatprep.mubr.bf16.mxu0 %v1359_v6  ;;  %355 = vmatprep.mubr.bf16.mxu1 %v1359_v6  ;;  %v1513_v32 = vrot.slane %v1507_v28, %v47_v27  ;;  %v1516_v33 = vrot.slane %v1507_v28, %v55_v29  ;;  %v1519_v34 = vrot.slane %v1507_v28, %v51_v30 }
  0x13   :  { %v1522_v35 = vrot.slane %v1507_v28, %v59_v31  ;;  %p1318_p3 = por %p1317_p2, %p1316_p1 }
  0x15   :  { %p1319_p4 = pnand %p1318_p3, %p1312_p0 }
  0x19   :  { %1140 = vmatmul.mubr.msk.bf16.gmra.mrb[8].mxu0 %vm165_vm0, %v1305_v19  ;;  %1148 = vmatmul.mubr.msk.bf16.gmra.mrb[8].mxu1 %vm165_vm0, %v1305_v19 }
  0x1a   :  { %252 = vmatprep.mubr.bf16.mxu0 %v1359_v6  ;;  %365 = vmatprep.mubr.bf16.mxu1 %v1359_v6 }
  0x21   :  { %1141 = vmatmul.mubr.msk.bf16.gmra.mrb[12].mxu0 %vm165_vm0, %v1306_v20  ;;  %1149 = vmatmul.mubr.msk.bf16.gmra.mrb[12].mxu1 %vm165_vm0, %v1306_v20 }
  0x22   :  { %262 = vmatprep.mubr.bf16.mxu0 %v1359_v6  ;;  %375 = vmatprep.mubr.bf16.mxu1 %v1359_v6 }
  0x29   :  { %1142 = vmatmul.mubr.msk.bf16.gmra.mrb[16].mxu0 %vm165_vm0, %v1307_v21  ;;  %1150 = vmatmul.mubr.msk.bf16.gmra.mrb[16].mxu1 %vm165_vm0, %v1307_v21 }
  0x2a   :  { %272 = vmatprep.mubr.bf16.mxu0 %v1359_v6  ;;  %385 = vmatprep.mubr.bf16.mxu1 %v1359_v6 }
  0x31   :  { %1143 = vmatmul.mubr.msk.bf16.gmra.mrb[20].mxu0 %vm165_vm0, %v1308_v22  ;;  %1151 = vmatmul.mubr.msk.bf16.gmra.mrb[20].mxu1 %vm165_vm0, %v1308_v22 }
  0x32   :  { %282 = vmatprep.mubr.bf16.mxu0 %v1359_v6  ;;  %395 = vmatprep.mubr.bf16.mxu1 %v1359_v6 }
  0x39   :  { %1144 = vmatmul.mubr.msk.bf16.gmra.mrb[24].mxu0 %vm165_vm0, %v1309_v23  ;;  %1152 = vmatmul.mubr.msk.bf16.gmra.mrb[24].mxu1 %vm165_vm0, %v1309_v23 }
  0x3a   :  { %292 = vmatprep.mubr.bf16.mxu0 %v1359_v6  ;;  %405 = vmatprep.mubr.bf16.mxu1 %v1359_v6 }
  0x41   :  { %1145 = vmatmul.mubr.msk.bf16.gmra.mrb[28].mxu0 %vm165_vm0, %v1310_v24  ;;  %1153 = vmatmul.mubr.msk.bf16.gmra.mrb[28].mxu1 %vm165_vm0, %v1310_v24 }
  0x42   :  { %448 = vmatprep.mubr.bf16.mxu0 %v1359_v6  ;;  %561 = vmatprep.mubr.bf16.mxu1 %v1359_v6 }
  0x49   :  { %1154 = vmatmul.mubr.msk.bf16.vlgmr.msra.gmra.mrb[32].mxu0 %vm165_vm0, %v1303_v9  ;;  %1162 = vmatmul.mubr.msk.bf16.vlgmr.msra.gmra.mrb[32].mxu1 %vm165_vm0, %v1303_v9 }
  0x4a   :  { %458 = vmatprep.mubr.bf16.mxu0 %v1359_v6  ;;  %571 = vmatprep.mubr.bf16.mxu1 %v1359_v6 }
  0x51   :  { %1155 = vmatmul.mubr.msk.bf16.gmra.mrb[36].mxu0 %vm165_vm0, %v1304_v18  ;;  %1163 = vmatmul.mubr.msk.bf16.gmra.mrb[36].mxu1 %vm165_vm0, %v1304_v18 }
  0x52   :  { %468 = vmatprep.mubr.bf16.mxu0 %v1359_v6  ;;  %581 = vmatprep.mubr.bf16.mxu1 %v1359_v6 }
  0x59   :  { %1156 = vmatmul.mubr.msk.bf16.gmra.mrb[40].mxu0 %vm165_vm0, %v1305_v19  ;;  %1164 = vmatmul.mubr.msk.bf16.gmra.mrb[40].mxu1 %vm165_vm0, %v1305_v19 }
  0x5a   :  { %478 = vmatprep.mubr.bf16.mxu0 %v1359_v6  ;;  %591 = vmatprep.mubr.bf16.mxu1 %v1359_v6 }
  0x61   :  { %1157 = vmatmul.mubr.msk.bf16.gmra.mrb[44].mxu0 %vm165_vm0, %v1306_v20  ;;  %1165 = vmatmul.mubr.msk.bf16.gmra.mrb[44].mxu1 %vm165_vm0, %v1306_v20 }
  0x62   :  { %488 = vmatprep.mubr.bf16.mxu0 %v1359_v6  ;;  %601 = vmatprep.mubr.bf16.mxu1 %v1359_v6 }
  0x69   :  { %1158 = vmatmul.mubr.msk.bf16.gmra.mrb[48].mxu0 %vm165_vm0, %v1307_v21  ;;  %1166 = vmatmul.mubr.msk.bf16.gmra.mrb[48].mxu1 %vm165_vm0, %v1307_v21 }
  0x6a   :  { %498 = vmatprep.mubr.bf16.mxu0 %v1359_v6  ;;  %611 = vmatprep.mubr.bf16.mxu1 %v1359_v6 }
  0x71   :  { %1159 = vmatmul.mubr.msk.bf16.gmra.mrb[52].mxu0 %vm165_vm0, %v1308_v22  ;;  %1167 = vmatmul.mubr.msk.bf16.gmra.mrb[52].mxu1 %vm165_vm0, %v1308_v22 }
  0x72   :  { %508 = vmatprep.mubr.bf16.mxu0 %v1359_v6  ;;  %621 = vmatprep.mubr.bf16.mxu1 %v1359_v6 }
  0x79   :  { %1160 = vmatmul.mubr.msk.bf16.gmra.mrb[56].mxu0 %vm165_vm0, %v1309_v23  ;;  %1168 = vmatmul.mubr.msk.bf16.gmra.mrb[56].mxu1 %vm165_vm0, %v1309_v23 }
  0x7a   :  { %518 = vmatprep.mubr.bf16.mxu0 %v1359_v6  ;;  %631 = vmatprep.mubr.bf16.mxu1 %v1359_v6 }
  0x81   :  { %1161 = vmatmul.mubr.msk.bf16.gmra.mrb[60].mxu0 %vm165_vm0, %v1310_v24  ;;  %1169 = vmatmul.mubr.msk.bf16.gmra.mrb[60].mxu1 %vm165_vm0, %v1310_v24 }
  0xdc   :  { %v224_v36 = vpop.f32.mrb[0].mxu0  ;;  %v337_v38 = vpop.f32.mrb[0].mxu1 }
  0xdd   :  { %v225_v37 = vadd.f32 %v224_v36, %v1513_v32  ;;  %v226_v39 = vpop.f32.mrb[1].mxu0  ;;  %v338_v40 = vadd.f32 %v337_v38, %v1516_v33  ;;  %v339_v42 = vpop.f32.mrb[1].mxu1 }
  0xde   :  { %v227_v41 = vadd.f32 %v226_v39, %v1519_v34  ;;  %v228_v43 = vpop.f32.mrb[2].mxu0  ;;  %v340_v44 = vadd.f32 %v339_v42, %v1522_v35  ;;  %v341_v46 = vpop.f32.mrb[2].mxu1 }
  0xdf   :  { %v229_v45 = vadd.f32 %v228_v43, %v1513_v32  ;;  %v230_v47 = vpop.f32.mrb[3].mxu0  ;;  %v342_v49 = vadd.f32 %v341_v46, %v1516_v33  ;;  %v343_v51 = vpop.f32.mrb[3].mxu1 }
  0xe0   :  { %v1234_v48 = vpack.c.bf16 %v227_v41, %v225_v37  ;;  %v231_v50 = vadd.f32 %v230_v47, %v1519_v34  ;;  %v1235_v52 = vpack.c.bf16 %v340_v44, %v338_v40  ;;  %v344_v53 = vadd.f32 %v343_v51, %v1522_v35 }
  0xe2   :  { %834 = vst [vmem:[#allocation2] sm:$0xff] %v1234_v48  ;;  %v1236_v54 = vpack.c.bf16 %v231_v50, %v229_v45  ;;  %835 = vst [vmem:[#allocation2 + $0x8] sm:$0xff] %v1235_v52  ;;  %v1237_v55 = vpack.c.bf16 %v344_v53, %v342_v49 }
  0xe4   :  { %836 = vst [vmem:[#allocation2 + $0x10] sm:$0xff] %v1236_v54  ;;  %v234_v56 = vpop.f32.mrb[4].mxu0  ;;  %837 = vst [vmem:[#allocation2 + $0x18] sm:$0xff] %v1237_v55  ;;  %v347_v58 = vpop.f32.mrb[4].mxu1 }
  0xe5   :  { %v235_v57 = vadd.f32 %v234_v56, %v1513_v32  ;;  %v236_v59 = vpop.f32.mrb[5].mxu0  ;;  %v348_v60 = vadd.f32 %v347_v58, %v1516_v33  ;;  %v349_v62 = vpop.f32.mrb[5].mxu1 }
  0xe6   :  { %v237_v61 = vadd.f32 %v236_v59, %v1519_v34  ;;  %v238_v63 = vpop.f32.mrb[6].mxu0  ;;  %v350_v0 = vadd.f32 %v349_v62, %v1522_v35  ;;  %v351_v2 = vpop.f32.mrb[6].mxu1 }
  0xe7   :  { %v239_v1 = vadd.f32 %v238_v63, %v1513_v32  ;;  %v240_v3 = vpop.f32.mrb[7].mxu0  ;;  %v352_v5 = vadd.f32 %v351_v2, %v1516_v33  ;;  %v353_v7 = vpop.f32.mrb[7].mxu1 }
  0xe8   :  { %v1238_v4 = vpack.c.bf16 %v237_v61, %v235_v57  ;;  %v241_v6 = vadd.f32 %v240_v3, %v1519_v34  ;;  %v1239_v8 = vpack.c.bf16 %v350_v0, %v348_v60  ;;  %v354_v9 = vadd.f32 %v353_v7, %v1522_v35 }
  0xea   :  { %838 = vst [vmem:[#allocation2 + $0x20] sm:$0xff] %v1238_v4  ;;  %v1240_v10 = vpack.c.bf16 %v241_v6, %v239_v1  ;;  %839 = vst [vmem:[#allocation2 + $0x28] sm:$0xff] %v1239_v8  ;;  %v1241_v11 = vpack.c.bf16 %v354_v9, %v352_v5 }
  0xec   :  { %840 = vst [vmem:[#allocation2 + $0x30] sm:$0xff] %v1240_v10  ;;  %v244_v12 = vpop.f32.mrb[8].mxu0  ;;  %841 = vst [vmem:[#allocation2 + $0x38] sm:$0xff] %v1241_v11  ;;  %v357_v14 = vpop.f32.mrb[8].mxu1 }
  0xed   :  { %v245_v13 = vadd.f32 %v244_v12, %v1513_v32  ;;  %v246_v15 = vpop.f32.mrb[9].mxu0  ;;  %v358_v16 = vadd.f32 %v357_v14, %v1516_v33  ;;  %v359_v18 = vpop.f32.mrb[9].mxu1 }
  0xee   :  { %v247_v17 = vadd.f32 %v246_v15, %v1519_v34  ;;  %v248_v19 = vpop.f32.mrb[10].mxu0  ;;  %v360_v20 = vadd.f32 %v359_v18, %v1522_v35  ;;  %v361_v22 = vpop.f32.mrb[10].mxu1 }
  0xef   :  { %v249_v21 = vadd.f32 %v248_v19, %v1513_v32  ;;  %v250_v23 = vpop.f32.mrb[11].mxu0  ;;  %v362_v25 = vadd.f32 %v361_v22, %v1516_v33  ;;  %v363_v29 = vpop.f32.mrb[11].mxu1 }
  0xf0   :  { %v1242_v24 = vpack.c.bf16 %v247_v17, %v245_v13  ;;  %v251_v27 = vadd.f32 %v250_v23, %v1519_v34  ;;  %v1243_v30 = vpack.c.bf16 %v360_v20, %v358_v16  ;;  %v364_v31 = vadd.f32 %v363_v29, %v1522_v35 }
  0xf2   :  { %842 = vst [vmem:[#allocation2 + $0x40] sm:$0xff] %v1242_v24  ;;  %v1244_v36 = vpack.c.bf16 %v251_v27, %v249_v21  ;;  %843 = vst [vmem:[#allocation2 + $0x48] sm:$0xff] %v1243_v30  ;;  %v1245_v37 = vpack.c.bf16 %v364_v31, %v362_v25 }
  0xf4   :  { %844 = vst [vmem:[#allocation2 + $0x50] sm:$0xff] %v1244_v36  ;;  %v254_v38 = vpop.f32.mrb[12].mxu0  ;;  %845 = vst [vmem:[#allocation2 + $0x58] sm:$0xff] %v1245_v37  ;;  %v367_v40 = vpop.f32.mrb[12].mxu1 }
  0xf5   :  { %v255_v39 = vadd.f32 %v254_v38, %v1513_v32  ;;  %v256_v41 = vpop.f32.mrb[13].mxu0  ;;  %v368_v42 = vadd.f32 %v367_v40, %v1516_v33  ;;  %v369_v44 = vpop.f32.mrb[13].mxu1 }
  0xf6   :  { %v257_v43 = vadd.f32 %v256_v41, %v1519_v34  ;;  %v258_v45 = vpop.f32.mrb[14].mxu0  ;;  %v370_v46 = vadd.f32 %v369_v44, %v1522_v35  ;;  %v371_v48 = vpop.f32.mrb[14].mxu1 }
  0xf7   :  { %v259_v47 = vadd.f32 %v258_v45, %v1513_v32  ;;  %v260_v49 = vpop.f32.mrb[15].mxu0  ;;  %v372_v51 = vadd.f32 %v371_v48, %v1516_v33  ;;  %v373_v53 = vpop.f32.mrb[15].mxu1 }
  0xf8   :  { %v1246_v50 = vpack.c.bf16 %v257_v43, %v255_v39  ;;  %v261_v52 = vadd.f32 %v260_v49, %v1519_v34  ;;  %v1247_v54 = vpack.c.bf16 %v370_v46, %v368_v42  ;;  %v374_v55 = vadd.f32 %v373_v53, %v1522_v35 }
  0xfa   :  { %846 = vst [vmem:[#allocation2 + $0x60] sm:$0xff] %v1246_v50  ;;  %v1248_v56 = vpack.c.bf16 %v261_v52, %v259_v47  ;;  %847 = vst [vmem:[#allocation2 + $0x68] sm:$0xff] %v1247_v54  ;;  %v1249_v57 = vpack.c.bf16 %v374_v55, %v372_v51 }
  0xfc   :  { %848 = vst [vmem:[#allocation2 + $0x70] sm:$0xff] %v1248_v56  ;;  %v264_v58 = vpop.f32.mrb[16].mxu0  ;;  %849 = vst [vmem:[#allocation2 + $0x78] sm:$0xff] %v1249_v57  ;;  %v377_v60 = vpop.f32.mrb[16].mxu1 }
  0xfd   :  { %v265_v59 = vadd.f32 %v264_v58, %v1513_v32  ;;  %v266_v61 = vpop.f32.mrb[17].mxu0  ;;  %v378_v62 = vadd.f32 %v377_v60, %v1516_v33  ;;  %v379_v0 = vpop.f32.mrb[17].mxu1 }
  0xfe   :  { %v267_v63 = vadd.f32 %v266_v61, %v1519_v34  ;;  %v268_v1 = vpop.f32.mrb[18].mxu0  ;;  %v380_v2 = vadd.f32 %v379_v0, %v1522_v35  ;;  %v381_v4 = vpop.f32.mrb[18].mxu1  ;;  %v63_v0 = vsub.s32 4, %v1501_v26 }
  0xff   :  { %v269_v3 = vadd.f32 %v268_v1, %v1513_v32  ;;  %v270_v5 = vpop.f32.mrb[19].mxu0  ;;  %v382_v7 = vadd.f32 %v381_v4, %v1516_v33  ;;  %v383_v9 = vpop.f32.mrb[19].mxu1 }
 0x100   :  { %v1250_v6 = vpack.c.bf16 %v267_v63, %v265_v59  ;;  %v271_v8 = vadd.f32 %v270_v5, %v1519_v34  ;;  %v1251_v10 = vpack.c.bf16 %v380_v2, %v378_v62  ;;  %v384_v11 = vadd.f32 %v383_v9, %v1522_v35 }
 0x101   :  { %v71_v5 = vsub.s32 6, %v1501_v26 }
 0x102   :  { %850 = vst [vmem:[#allocation2 + $0x80] sm:$0xff] %v1250_v6  ;;  %v1252_v12 = vpack.c.bf16 %v271_v8, %v269_v3  ;;  %851 = vst [vmem:[#allocation2 + $0x88] sm:$0xff] %v1251_v10  ;;  %v1253_v13 = vpack.c.bf16 %v384_v11, %v382_v7  ;;  %v67_v6 = vsub.s32 5, %v1501_v26  ;;  %v75_v11 = vsub.s32 7, %v1501_v26 }
 0x104   :  { %852 = vst [vmem:[#allocation2 + $0x90] sm:$0xff] %v1252_v12  ;;  %v274_v14 = vpop.f32.mrb[20].mxu0  ;;  %853 = vst [vmem:[#allocation2 + $0x98] sm:$0xff] %v1253_v13  ;;  %v387_v16 = vpop.f32.mrb[20].mxu1  ;;  %v1599_v26 = vrot.slane %v1507_v28, %v67_v6 }
 0x105   :  { %v275_v15 = vadd.f32 %v274_v14, %v1513_v32  ;;  %v276_v17 = vpop.f32.mrb[21].mxu0  ;;  %v388_v18 = vadd.f32 %v387_v16, %v1516_v33  ;;  %v389_v20 = vpop.f32.mrb[21].mxu1 }
 0x106   :  { %v277_v19 = vadd.f32 %v276_v17, %v1519_v34  ;;  %v278_v21 = vpop.f32.mrb[22].mxu0  ;;  %v390_v22 = vadd.f32 %v389_v20, %v1522_v35  ;;  %v391_v24 = vpop.f32.mrb[22].mxu1 }
 0x107   :  { %v279_v23 = vadd.f32 %v278_v21, %v1513_v32  ;;  %v280_v25 = vpop.f32.mrb[23].mxu0  ;;  %v392_v29 = vadd.f32 %v391_v24, %v1516_v33  ;;  %v393_v31 = vpop.f32.mrb[23].mxu1 }
 0x108   :  { %v1254_v27 = vpack.c.bf16 %v277_v19, %v275_v15  ;;  %v281_v30 = vadd.f32 %v280_v25, %v1519_v34  ;;  %v1255_v36 = vpack.c.bf16 %v390_v22, %v388_v18  ;;  %v394_v37 = vadd.f32 %v393_v31, %v1522_v35 }
 0x109   :  { %v1593_v18 = vrot.slane %v1507_v28, %v63_v0  ;;  %v1596_v19 = vrot.slane %v1507_v28, %v71_v5 }
 0x10a   :  { %854 = vst [vmem:[#allocation2 + $0xa0] sm:$0xff] %v1254_v27  ;;  %v1256_v38 = vpack.c.bf16 %v281_v30, %v279_v23  ;;  %855 = vst [vmem:[#allocation2 + $0xa8] sm:$0xff] %v1255_v36  ;;  %v1257_v39 = vpack.c.bf16 %v394_v37, %v392_v29 }
 0x10c   :  { %856 = vst [vmem:[#allocation2 + $0xb0] sm:$0xff] %v1256_v38  ;;  %v284_v40 = vpop.f32.mrb[24].mxu0  ;;  %857 = vst [vmem:[#allocation2 + $0xb8] sm:$0xff] %v1257_v39  ;;  %v397_v42 = vpop.f32.mrb[24].mxu1 }
 0x10d   :  { %v285_v41 = vadd.f32 %v284_v40, %v1513_v32  ;;  %v286_v43 = vpop.f32.mrb[25].mxu0  ;;  %v398_v44 = vadd.f32 %v397_v42, %v1516_v33  ;;  %v399_v46 = vpop.f32.mrb[25].mxu1 }
 0x10e   :  { %v287_v45 = vadd.f32 %v286_v43, %v1519_v34  ;;  %v288_v47 = vpop.f32.mrb[26].mxu0  ;;  %v400_v48 = vadd.f32 %v399_v46, %v1522_v35  ;;  %v401_v50 = vpop.f32.mrb[26].mxu1 }
 0x10f   :  { %v289_v49 = vadd.f32 %v288_v47, %v1513_v32  ;;  %v290_v51 = vpop.f32.mrb[27].mxu0  ;;  %v402_v53 = vadd.f32 %v401_v50, %v1516_v33  ;;  %v403_v55 = vpop.f32.mrb[27].mxu1 }
 0x110   :  { %v1258_v52 = vpack.c.bf16 %v287_v45, %v285_v41  ;;  %v291_v54 = vadd.f32 %v290_v51, %v1519_v34  ;;  %v1259_v56 = vpack.c.bf16 %v400_v48, %v398_v44  ;;  %v404_v57 = vadd.f32 %v403_v55, %v1522_v35 }
 0x112   :  { %858 = vst [vmem:[#allocation2 + $0xc0] sm:$0xff] %v1258_v52  ;;  %v1260_v58 = vpack.c.bf16 %v291_v54, %v289_v49  ;;  %859 = vst [vmem:[#allocation2 + $0xc8] sm:$0xff] %v1259_v56  ;;  %v1261_v59 = vpack.c.bf16 %v404_v57, %v402_v53 }
 0x114   :  { %860 = vst [vmem:[#allocation2 + $0xd0] sm:$0xff] %v1260_v58  ;;  %v294_v60 = vpop.f32.mrb[28].mxu0  ;;  %861 = vst [vmem:[#allocation2 + $0xd8] sm:$0xff] %v1261_v59  ;;  %v407_v62 = vpop.f32.mrb[28].mxu1 }
 0x115   :  { %v295_v61 = vadd.f32 %v294_v60, %v1513_v32  ;;  %v296_v63 = vpop.f32.mrb[29].mxu0  ;;  %v408_v1 = vadd.f32 %v407_v62, %v1516_v33  ;;  %v409_v3 = vpop.f32.mrb[29].mxu1 }
 0x116   :  { %v297_v2 = vadd.f32 %v296_v63, %v1519_v34  ;;  %v298_v4 = vpop.f32.mrb[30].mxu0  ;;  %v410_v7 = vadd.f32 %v409_v3, %v1522_v35  ;;  %v411_v9 = vpop.f32.mrb[30].mxu1 }
 0x117   :  { %v299_v8 = vadd.f32 %v298_v4, %v1513_v32  ;;  %v300_v10 = vpop.f32.mrb[31].mxu0  ;;  %v412_v13 = vadd.f32 %v411_v9, %v1516_v33  ;;  %v413_v15 = vpop.f32.mrb[31].mxu1 }
 0x118   :  { %v1262_v12 = vpack.c.bf16 %v297_v2, %v295_v61  ;;  %v301_v14 = vadd.f32 %v300_v10, %v1519_v34  ;;  %v1263_v16 = vpack.c.bf16 %v410_v7, %v408_v1  ;;  %v414_v17 = vadd.f32 %v413_v15, %v1522_v35 }
 0x119   :  { %v1604_v34 = vrot.slane %v1507_v28, %v75_v11 }
 0x11a   :  { %862 = vst [vmem:[#allocation2 + $0xe0] sm:$0xff] %v1262_v12  ;;  %v1264_v32 = vpack.c.bf16 %v301_v14, %v299_v8  ;;  %863 = vst [vmem:[#allocation2 + $0xe8] sm:$0xff] %v1263_v16  ;;  %v1265_v33 = vpack.c.bf16 %v414_v17, %v412_v13 }
 0x11c   :  { %864 = vst [vmem:[#allocation2 + $0xf0] sm:$0xff] %v1264_v32  ;;  %v450_v35 = vpop.f32.mrb[32].mxu0  ;;  %865 = vst [vmem:[#allocation2 + $0xf8] sm:$0xff] %v1265_v33  ;;  %v563_v21 = vpop.f32.mrb[32].mxu1 }
 0x11d   :  { %v451_v20 = vadd.f32 %v450_v35, %v1593_v18  ;;  %v452_v22 = vpop.f32.mrb[33].mxu0  ;;  %v564_v23 = vadd.f32 %v563_v21, %v1596_v19  ;;  %v565_v25 = vpop.f32.mrb[33].mxu1 }
 0x11e   :  { %v453_v24 = vadd.f32 %v452_v22, %v1599_v26  ;;  %v454_v27 = vpop.f32.mrb[34].mxu0 }
 0x11f   :  { %1322 = shalt.err (!%p1319_p4)
}
 0x120   :  { %s1323_s25 = scalar_lea.hbm %s1708_s3, 4096 }
 0x121   :  { %p1324_p5 = scmp.ne.s32.totalorder %s1708_s3, %s1323_s25  ;;  %p1327_p6 = scmp.lt.u32.totalorder %s1323_s25, %s1708_s3 }
 0x123   :  { %p1329_p7 = pnand %p1327_p6, %p1324_p5 }
 0x125   :  { %1332 = shalt.err (!%p1329_p7)
}
 0x126   :  { %s1361_s30 = smov 256   ;;  %s1362_s5 = smov 16   ;;  %v566_v28 = vadd.f32 %v565_v25, %v1604_v34  ;;  %v455_v29 = vadd.f32 %v454_v27, %v1593_v18  ;;  %v567_v30 = vpop.f32.mrb[34].mxu1  ;;  %v456_v31 = vpop.f32.mrb[35].mxu0  ;;  %v1266_v36 = vpack.c.bf16 %v453_v24, %v451_v20 }
 0x127   :  { %1101 = dma.vmem_to_hbm [thread:$0]  %s1601_s21, 4096, %s1708_s3, [#allocation3], %s1361_s30, %s1361_s30, %s1362_s5   ;;  %v568_v37 = vadd.f32 %v567_v30, %v1596_v19  ;;  %v457_v38 = vadd.f32 %v456_v31, %v1599_v26  ;;  %v569_v39 = vpop.f32.mrb[35].mxu1  ;;  %v460_v44 = vpop.f32.mrb[36].mxu0 }
 0x128   :  { %v1267_v40 = vpack.c.bf16 %v566_v28, %v564_v23  ;;  %v570_v41 = vadd.f32 %v569_v39, %v1604_v34  ;;  %1058 = vst [vmem:[#allocation4] sm:$0xff] %v1266_v36  ;;  %v461_v45 = vadd.f32 %v460_v44, %v1593_v18  ;;  %v573_v46 = vpop.f32.mrb[36].mxu1  ;;  %v462_v47 = vpop.f32.mrb[37].mxu0  ;;  %s1363_s3 = smov [#allocation4]  }
 0x129   :  { %v1268_v42 = vpack.c.bf16 %v457_v38, %v455_v29  ;;  %v574_v48 = vadd.f32 %v573_v46, %v1596_v19  ;;  %v463_v49 = vadd.f32 %v462_v47, %v1599_v26  ;;  %v575_v50 = vpop.f32.mrb[37].mxu1  ;;  %v464_v51 = vpop.f32.mrb[38].mxu0  ;;  %s1107_s7 = sshll.u32 %s1363_s3, 4  ;;  %s1108_s7 = int_to_ptr.vmem [resolvable:$true] %s1107_s7 }
 0x12a   :  { %1059 = vst [vmem:[#allocation4 + $0x8] sm:$0xff] %v1267_v40  ;;  %v1269_v43 = vpack.c.bf16 %v570_v41, %v568_v37  ;;  %v576_v52 = vadd.f32 %v575_v50, %v1604_v34  ;;  %v465_v53 = vadd.f32 %v464_v51, %v1593_v18  ;;  %v577_v54 = vpop.f32.mrb[38].mxu1  ;;  %v466_v55 = vpop.f32.mrb[39].mxu0  ;;  %s1333_s8 = scalar_lea.vmem %s1108_s7, 4096  ;;  %p1338_p9 = scmp.lt.s32.totalorder %s1108_s7, %s1108_s7 }
 0x12b   :  { %1060 = vst [vmem:[#allocation4 + $0x10] sm:$0xff] %v1268_v42  ;;  %v1270_v56 = vpack.c.bf16 %v463_v49, %v461_v45  ;;  %v578_v57 = vadd.f32 %v577_v54, %v1596_v19  ;;  %v467_v58 = vadd.f32 %v466_v55, %v1599_v26  ;;  %v579_v59 = vpop.f32.mrb[39].mxu1  ;;  %p1334_p8 = scmp.ne.s32.totalorder %s1108_s7, %s1333_s8  ;;  %p1339_p10 = scmp.lt.s32.totalorder %s1333_s8, %s1333_s8 }
 0x12c   :  { %1061 = vst [vmem:[#allocation4 + $0x18] sm:$0xff] %v1269_v43  ;;  %v1271_v60 = vpack.c.bf16 %v576_v52, %v574_v48  ;;  %v580_v61 = vadd.f32 %v579_v59, %v1604_v34  ;;  %v470_v0 = vpop.f32.mrb[40].mxu0  ;;  %v583_v2 = vpop.f32.mrb[40].mxu1 }
 0x12d   :  { %1062 = vst [vmem:[#allocation4 + $0x20] sm:$0xff] %v1270_v56  ;;  %v1272_v62 = vpack.c.bf16 %v467_v58, %v465_v53  ;;  %v471_v1 = vadd.f32 %v470_v0, %v1593_v18  ;;  %v472_v3 = vpop.f32.mrb[41].mxu0  ;;  %v584_v4 = vadd.f32 %v583_v2, %v1596_v19  ;;  %v585_v6 = vpop.f32.mrb[41].mxu1  ;;  %p1340_p11 = por %p1339_p10, %p1338_p9 }
 0x12e   :  { %1063 = vst [vmem:[#allocation4 + $0x28] sm:$0xff] %v1271_v60  ;;  %v1273_v63 = vpack.c.bf16 %v580_v61, %v578_v57  ;;  %v473_v5 = vadd.f32 %v472_v3, %v1599_v26  ;;  %v474_v7 = vpop.f32.mrb[42].mxu0  ;;  %v586_v8 = vadd.f32 %v585_v6, %v1604_v34  ;;  %v587_v10 = vpop.f32.mrb[42].mxu1 }
 0x12f   :  { %1064 = vst [vmem:[#allocation4 + $0x30] sm:$0xff] %v1272_v62  ;;  %v475_v9 = vadd.f32 %v474_v7, %v1593_v18  ;;  %v476_v11 = vpop.f32.mrb[43].mxu0  ;;  %v588_v13 = vadd.f32 %v587_v10, %v1596_v19  ;;  %v589_v15 = vpop.f32.mrb[43].mxu1  ;;  %p1341_p12 = pnand %p1340_p11, %p1334_p8 }
 0x130   :  { %1065 = vst [vmem:[#allocation4 + $0x38] sm:$0xff] %v1273_v63  ;;  %v1274_v12 = vpack.c.bf16 %v473_v5, %v471_v1  ;;  %v477_v14 = vadd.f32 %v476_v11, %v1599_v26  ;;  %v1275_v16 = vpack.c.bf16 %v586_v8, %v584_v4  ;;  %v590_v17 = vadd.f32 %v589_v15, %v1604_v34 }
 0x132   :  { %1066 = vst [vmem:[#allocation4 + $0x40] sm:$0xff] %v1274_v12  ;;  %v1276_v32 = vpack.c.bf16 %v477_v14, %v475_v9  ;;  %1067 = vst [vmem:[#allocation4 + $0x48] sm:$0xff] %v1275_v16  ;;  %v1277_v33 = vpack.c.bf16 %v590_v17, %v588_v13 }
 0x134   :  { %1068 = vst [vmem:[#allocation4 + $0x50] sm:$0xff] %v1276_v32  ;;  %v480_v35 = vpop.f32.mrb[44].mxu0  ;;  %1069 = vst [vmem:[#allocation4 + $0x58] sm:$0xff] %v1277_v33  ;;  %v593_v21 = vpop.f32.mrb[44].mxu1 }
 0x135   :  { %v481_v20 = vadd.f32 %v480_v35, %v1593_v18  ;;  %v482_v22 = vpop.f32.mrb[45].mxu0  ;;  %v594_v23 = vadd.f32 %v593_v21, %v1596_v19  ;;  %v595_v25 = vpop.f32.mrb[45].mxu1 }
 0x136   :  { %v483_v24 = vadd.f32 %v482_v22, %v1599_v26  ;;  %v484_v27 = vpop.f32.mrb[46].mxu0  ;;  %v596_v28 = vadd.f32 %v595_v25, %v1604_v34  ;;  %v597_v30 = vpop.f32.mrb[46].mxu1 }
 0x137   :  { %v485_v29 = vadd.f32 %v484_v27, %v1593_v18  ;;  %v486_v31 = vpop.f32.mrb[47].mxu0  ;;  %v598_v37 = vadd.f32 %v597_v30, %v1596_v19  ;;  %v599_v39 = vpop.f32.mrb[47].mxu1 }
 0x138   :  { %v1278_v36 = vpack.c.bf16 %v483_v24, %v481_v20  ;;  %v487_v38 = vadd.f32 %v486_v31, %v1599_v26  ;;  %v1279_v40 = vpack.c.bf16 %v596_v28, %v594_v23  ;;  %v600_v41 = vadd.f32 %v599_v39, %v1604_v34 }
 0x13a   :  { %1070 = vst [vmem:[#allocation4 + $0x60] sm:$0xff] %v1278_v36  ;;  %v1280_v42 = vpack.c.bf16 %v487_v38, %v485_v29  ;;  %1071 = vst [vmem:[#allocation4 + $0x68] sm:$0xff] %v1279_v40  ;;  %v1281_v43 = vpack.c.bf16 %v600_v41, %v598_v37 }
 0x13c   :  { %1072 = vst [vmem:[#allocation4 + $0x70] sm:$0xff] %v1280_v42  ;;  %v490_v44 = vpop.f32.mrb[48].mxu0  ;;  %1073 = vst [vmem:[#allocation4 + $0x78] sm:$0xff] %v1281_v43  ;;  %v603_v46 = vpop.f32.mrb[48].mxu1 }
 0x13d   :  { %v491_v45 = vadd.f32 %v490_v44, %v1593_v18  ;;  %v492_v47 = vpop.f32.mrb[49].mxu0  ;;  %v604_v48 = vadd.f32 %v603_v46, %v1596_v19  ;;  %v605_v50 = vpop.f32.mrb[49].mxu1 }
 0x13e   :  { %v493_v49 = vadd.f32 %v492_v47, %v1599_v26  ;;  %v494_v51 = vpop.f32.mrb[50].mxu0  ;;  %v606_v52 = vadd.f32 %v605_v50, %v1604_v34  ;;  %v607_v54 = vpop.f32.mrb[50].mxu1 }
 0x13f   :  { %v495_v53 = vadd.f32 %v494_v51, %v1593_v18  ;;  %v496_v55 = vpop.f32.mrb[51].mxu0  ;;  %v608_v57 = vadd.f32 %v607_v54, %v1596_v19  ;;  %v609_v59 = vpop.f32.mrb[51].mxu1 }
 0x140   :  { %v1282_v56 = vpack.c.bf16 %v493_v49, %v491_v45  ;;  %v497_v58 = vadd.f32 %v496_v55, %v1599_v26  ;;  %v1283_v60 = vpack.c.bf16 %v606_v52, %v604_v48  ;;  %v610_v61 = vadd.f32 %v609_v59, %v1604_v34 }
 0x142   :  { %1074 = vst [vmem:[#allocation4 + $0x80] sm:$0xff] %v1282_v56  ;;  %v1284_v62 = vpack.c.bf16 %v497_v58, %v495_v53  ;;  %1075 = vst [vmem:[#allocation4 + $0x88] sm:$0xff] %v1283_v60  ;;  %v1285_v63 = vpack.c.bf16 %v610_v61, %v608_v57 }
 0x144   :  { %1076 = vst [vmem:[#allocation4 + $0x90] sm:$0xff] %v1284_v62  ;;  %v500_v0 = vpop.f32.mrb[52].mxu0  ;;  %1077 = vst [vmem:[#allocation4 + $0x98] sm:$0xff] %v1285_v63  ;;  %v613_v2 = vpop.f32.mrb[52].mxu1 }
 0x145   :  { %v501_v1 = vadd.f32 %v500_v0, %v1593_v18  ;;  %v502_v3 = vpop.f32.mrb[53].mxu0  ;;  %v614_v4 = vadd.f32 %v613_v2, %v1596_v19  ;;  %v615_v6 = vpop.f32.mrb[53].mxu1 }
 0x146   :  { %v503_v5 = vadd.f32 %v502_v3, %v1599_v26  ;;  %v504_v7 = vpop.f32.mrb[54].mxu0  ;;  %v616_v8 = vadd.f32 %v615_v6, %v1604_v34  ;;  %v617_v10 = vpop.f32.mrb[54].mxu1 }
 0x147   :  { %v505_v9 = vadd.f32 %v504_v7, %v1593_v18  ;;  %v506_v11 = vpop.f32.mrb[55].mxu0  ;;  %v618_v13 = vadd.f32 %v617_v10, %v1596_v19  ;;  %v619_v15 = vpop.f32.mrb[55].mxu1 }
 0x148   :  { %v1286_v12 = vpack.c.bf16 %v503_v5, %v501_v1  ;;  %v507_v14 = vadd.f32 %v506_v11, %v1599_v26  ;;  %v1287_v16 = vpack.c.bf16 %v616_v8, %v614_v4  ;;  %v620_v17 = vadd.f32 %v619_v15, %v1604_v34 }
 0x14a   :  { %1078 = vst [vmem:[#allocation4 + $0xa0] sm:$0xff] %v1286_v12  ;;  %v1288_v32 = vpack.c.bf16 %v507_v14, %v505_v9  ;;  %1079 = vst [vmem:[#allocation4 + $0xa8] sm:$0xff] %v1287_v16  ;;  %v1289_v33 = vpack.c.bf16 %v620_v17, %v618_v13 }
 0x14c   :  { %1080 = vst [vmem:[#allocation4 + $0xb0] sm:$0xff] %v1288_v32  ;;  %v510_v35 = vpop.f32.mrb[56].mxu0  ;;  %1081 = vst [vmem:[#allocation4 + $0xb8] sm:$0xff] %v1289_v33  ;;  %v623_v21 = vpop.f32.mrb[56].mxu1 }
 0x14d   :  { %v511_v20 = vadd.f32 %v510_v35, %v1593_v18  ;;  %v512_v22 = vpop.f32.mrb[57].mxu0  ;;  %v624_v23 = vadd.f32 %v623_v21, %v1596_v19  ;;  %v625_v25 = vpop.f32.mrb[57].mxu1 }
 0x14e   :  { %v513_v24 = vadd.f32 %v512_v22, %v1599_v26  ;;  %v514_v27 = vpop.f32.mrb[58].mxu0  ;;  %v626_v28 = vadd.f32 %v625_v25, %v1604_v34  ;;  %v627_v30 = vpop.f32.mrb[58].mxu1 }
 0x14f   :  { %v515_v29 = vadd.f32 %v514_v27, %v1593_v18  ;;  %v516_v31 = vpop.f32.mrb[59].mxu0  ;;  %v628_v37 = vadd.f32 %v627_v30, %v1596_v19  ;;  %v629_v39 = vpop.f32.mrb[59].mxu1 }
 0x150   :  { %v1290_v36 = vpack.c.bf16 %v513_v24, %v511_v20  ;;  %v517_v38 = vadd.f32 %v516_v31, %v1599_v26  ;;  %v1291_v40 = vpack.c.bf16 %v626_v28, %v624_v23  ;;  %v630_v41 = vadd.f32 %v629_v39, %v1604_v34 }
 0x152   :  { %1082 = vst [vmem:[#allocation4 + $0xc0] sm:$0xff] %v1290_v36  ;;  %v1292_v42 = vpack.c.bf16 %v517_v38, %v515_v29  ;;  %1083 = vst [vmem:[#allocation4 + $0xc8] sm:$0xff] %v1291_v40  ;;  %v1293_v43 = vpack.c.bf16 %v630_v41, %v628_v37 }
 0x154   :  { %1084 = vst [vmem:[#allocation4 + $0xd0] sm:$0xff] %v1292_v42  ;;  %v520_v44 = vpop.f32.mrb[60].mxu0  ;;  %1085 = vst [vmem:[#allocation4 + $0xd8] sm:$0xff] %v1293_v43  ;;  %v633_v46 = vpop.f32.mrb[60].mxu1 }
 0x155   :  { %v521_v45 = vadd.f32 %v520_v44, %v1593_v18  ;;  %v522_v47 = vpop.f32.mrb[61].mxu0  ;;  %v634_v48 = vadd.f32 %v633_v46, %v1596_v19  ;;  %v635_v50 = vpop.f32.mrb[61].mxu1 }
 0x156   :  { %v523_v49 = vadd.f32 %v522_v47, %v1599_v26  ;;  %v524_v51 = vpop.f32.mrb[62].mxu0  ;;  %v636_v52 = vadd.f32 %v635_v50, %v1604_v34  ;;  %v637_v54 = vpop.f32.mrb[62].mxu1 }
 0x157   :  { %v525_v53 = vadd.f32 %v524_v51, %v1593_v18  ;;  %v526_v55 = vpop.f32.mrb[63].mxu0  ;;  %v638_v57 = vadd.f32 %v637_v54, %v1596_v19  ;;  %v639_v59 = vpop.f32.mrb[63].mxu1 }
 0x158   :  { %v1294_v56 = vpack.c.bf16 %v523_v49, %v521_v45  ;;  %v527_v58 = vadd.f32 %v526_v55, %v1599_v26  ;;  %v1295_v60 = vpack.c.bf16 %v636_v52, %v634_v48  ;;  %v640_v61 = vadd.f32 %v639_v59, %v1604_v34 }
 0x15a   :  { %1086 = vst [vmem:[#allocation4 + $0xe0] sm:$0xff] %v1294_v56  ;;  %v1296_v62 = vpack.c.bf16 %v527_v58, %v525_v53  ;;  %1087 = vst [vmem:[#allocation4 + $0xe8] sm:$0xff] %v1295_v60  ;;  %v1297_v63 = vpack.c.bf16 %v640_v61, %v638_v57 }
 0x15c   :  { %1088 = vst [vmem:[#allocation4 + $0xf0] sm:$0xff] %v1296_v62  ;;  %1089 = vst [vmem:[#allocation4 + $0xf8] sm:$0xff] %v1297_v63 }
 0x15d   :  { %1344 = shalt.err (!%p1341_p12)
}
 0x15e   :  { %s1345_s11 = scalar_lea.hbm %s1709_s4, 4096 }
 0x15f   :  { %p1346_p13 = scmp.ne.s32.totalorder %s1709_s4, %s1345_s11  ;;  %p1349_p0 = scmp.lt.u32.totalorder %s1345_s11, %s1709_s4 }
 0x161   :  { %p1351_p1 = pnand %p1349_p0, %p1346_p13 }
 0x163   :  { %1354 = shalt.err (!%p1351_p1)
}
 0x164   :  { %1113 = dma.vmem_to_hbm [thread:$0]  %s1108_s7, 4096, %s1709_s4, [#allocation5], %s1361_s30, %s1361_s30, %s1362_s5  }
 0x165   :  { %1355 = dma.done.wait [#allocation3], 4096  }
 0x166   :  { %1356 = vsyncadd [#allocation3], 4294963200 }
 0x167   :  { %1357 = dma.done.wait [#allocation5], 4096  }
 0x168   :  { %1358 = vsyncadd [#allocation5], 4294963200 }
 0x169   :  { %1120 = vsyncpa [#allocation3], 1 }
 0x16a   :  { %1121 = vsyncpa [#allocation5], 1 }

</bundles_post_ra>
